<compile_context>
chip_gen: v5e
topology: v5e:2x2
jax: 0.10.0
libtpu: 0.0.40
codegen_flags: <defaults>
</compile_context>

<pallas_src>
import functools

import jax
import jax.numpy as jnp
from jax.experimental import pallas as pl
from jax.experimental.pallas import tpu as pltpu

KSIZE = 4
PAD = 2
BN_EPS = 1e-5
LRELU_SLOPE = 0.2

LANE = 128
SUBLANE = 8


def _round_up(x, m):
    return ((x + m - 1) // m) * m


# ----------------------------------------------------------------------------- kernel 1
def _conv_matmul_kernel(*refs, use_bias, fuse_lrelu, emit_stats):
    """Tiled patches @ W (bf16 in, f32 acc) with fused epilogue.

    refs = (p_ref, w_ref, [b_ref], o_ref, [stats_ref], acc_ref)
    grid = (M_tiles, K_tiles); K is the reduction ("arbitrary") axis.
    """
    i = 0
    p_ref = refs[i]; i += 1
    w_ref = refs[i]; i += 1
    b_ref = None
    if use_bias:
        b_ref = refs[i]; i += 1
    o_ref = refs[i]; i += 1
    stats_ref = None
    if emit_stats:
        stats_ref = refs[i]; i += 1
    acc_ref = refs[i]

    k = pl.program_id(1)

    @pl.when(k == 0)
    def _():
        acc_ref[...] = jnp.zeros_like(acc_ref)

    acc_ref[...] += jnp.dot(p_ref[...], w_ref[...],
                            preferred_element_type=jnp.float32)

    @pl.when(k == pl.num_programs(1) - 1)
    def _():
        acc = acc_ref[...]
        if use_bias:
            acc = acc + b_ref[...]                         # (TM, Cpad) + (1, Cpad)
        if emit_stats:
            # per-tile partial BN statistics (rows 0/1 of an 8-row block)
            s1 = jnp.sum(acc, axis=0, keepdims=True)       # (1, Cpad)
            s2 = jnp.sum(acc * acc, axis=0, keepdims=True)
            row = jax.lax.broadcasted_iota(jnp.int32, stats_ref.shape, 0)
            stats_ref[...] = jnp.where(row == 0, s1,
                                       jnp.where(row == 1, s2, 0.0))
        if fuse_lrelu:
            acc = jnp.where(acc > 0, acc, LRELU_SLOPE * acc)
        o_ref[...] = acc


# ----------------------------------------------------------------------------- kernel 2
def _bn_apply_kernel(y_ref, scale_ref, shift_ref, o_ref, *, apply_lrelu):
    """Elementwise BN apply (+ LeakyReLU), lane-dense tiles over M."""
    y = y_ref[...] * scale_ref[...] + shift_ref[...]
    if apply_lrelu:
        y = jnp.where(y > 0, y, LRELU_SLOPE * y)
    o_ref[...] = y


# ----------------------------------------------------------------------------- glue
def _im2col3d_ndhwc(x, k, stride, pad):
    """(N,D,H,W,C) -> (N*Do*Ho*Wo, k^3*C) patches, K-order (kd, kh, kw, C)."""
    N, D, H, W, C = x.shape
    xp = jnp.pad(x, ((0, 0), (pad, pad), (pad, pad), (pad, pad), (0, 0)))
    Do = (D + 2 * pad - k) // stride + 1
    Ho = (H + 2 * pad - k) // stride + 1
    Wo = (W + 2 * pad - k) // stride + 1
    cols = []
    for kd in range(k):
        for kh in range(k):
            for kw in range(k):
                sl = xp[:,
                        kd:kd + stride * (Do - 1) + 1:stride,
                        kh:kh + stride * (Ho - 1) + 1:stride,
                        kw:kw + stride * (Wo - 1) + 1:stride,
                        :]
                cols.append(sl)                            # (N, Do, Ho, Wo, C)
    p = jnp.stack(cols, axis=4)                            # (N, Do, Ho, Wo, k^3, C)
    return p.reshape(N * Do * Ho * Wo, k ** 3 * C), (N, Do, Ho, Wo)


def conv_block(x, w, b, *, stride, use_bn, use_lrelu):
    """One Conv3d(+BN)(+LeakyReLU) block. x is channels-last (N, D, H, W, C)."""
    Cout, Cin, k, _, _ = w.shape
    patches, (N, Do, Ho, Wo) = _im2col3d_ndhwc(x, k, stride, PAD)
    M, K = patches.shape

    # tile sizes (re-derived per-shape; all blocks satisfy the (8,128) rule)
    Cpad = _round_up(Cout, LANE)
    TM = min(256, _round_up(M, SUBLANE))
    TK = min(512, _round_up(K, LANE))
    Mp = _round_up(M, TM)
    Kp = _round_up(K, TK)
    Mt, Kt = Mp // TM, Kp // TK

    # bf16 inputs, lane-dense (Cout padded to 128) weight matrix
    p_bf = jnp.pad(patches, ((0, Mp - M), (0, Kp - K))).astype(jnp.bfloat16)
    w_mat = w.transpose(2, 3, 4, 1, 0).reshape(K, Cout)          # (K, Cout), matches patch K-order
    w_mat = jnp.pad(w_mat, ((0, Kp - K), (0, Cpad - Cout))).astype(jnp.bfloat16)

    use_bias = b is not None
    fuse_lrelu = use_lrelu and not use_bn
    emit_stats = use_bn

    inputs = [p_bf, w_mat]
    in_specs = [
        pl.BlockSpec((TM, TK), lambda m, kk: (m, kk)),
        pl.BlockSpec((TK, Cpad), lambda m, kk: (kk, 0)),
    ]
    if use_bias:
        bias = jnp.pad(b.astype(jnp.float32), (0, Cpad - Cout)).reshape(1, Cpad)
        inputs.append(bias)
        in_specs.append(pl.BlockSpec((1, Cpad), lambda m, kk: (0, 0)))

    out_shapes = [jax.ShapeDtypeStruct((Mp, Cpad), jnp.float32)]
    out_specs = [pl.BlockSpec((TM, Cpad), lambda m, kk: (m, 0))]
    if emit_stats:
        out_shapes.append(jax.ShapeDtypeStruct((Mt * SUBLANE, Cpad), jnp.float32))
        out_specs.append(pl.BlockSpec((SUBLANE, Cpad), lambda m, kk: (m, 0)))

    kern = functools.partial(_conv_matmul_kernel, use_bias=use_bias,
                             fuse_lrelu=fuse_lrelu, emit_stats=emit_stats)
    cost = pl.CostEstimate(
        flops=2 * Mp * Kp * Cpad,
        transcendentals=0,
        bytes_accessed=Mp * Kp * 2 + Kp * Cpad * 2 + Mp * Cpad * 4,
    )

    outs = pl.pallas_call(
        kern,
        grid=(Mt, Kt),
        out_shape=tuple(out_shapes),
        in_specs=in_specs,
        out_specs=tuple(out_specs),
        scratch_shapes=[pltpu.VMEM((TM, Cpad), jnp.float32)],
        compiler_params=pltpu.CompilerParams(
            dimension_semantics=("parallel", "arbitrary"),
            vmem_limit_bytes=32 * 1024 * 1024),
        cost_estimate=cost,
    )(*inputs)

    y = outs[0]                                            # (Mp, Cpad) f32, pre-BN

    if emit_stats:
        # reduce per-tile partials -> exact batch statistics (padded rows are zero)
        stats = outs[1].reshape(Mt, SUBLANE, Cpad)
        total = jnp.sum(stats[:, 0, :], axis=0)
        totsq = jnp.sum(stats[:, 1, :], axis=0)
        mean = total / M
        var = totsq / M - mean * mean                      # biased var (PyTorch BN fwd)
        inv = jax.lax.rsqrt(var + BN_EPS)
        scale = inv.reshape(1, Cpad)                       # gamma = 1
        shift = (-mean * inv).reshape(1, Cpad)             # beta  = 0

        y = pl.pallas_call(
            functools.partial(_bn_apply_kernel, apply_lrelu=use_lrelu),
            grid=(Mt,),
            out_shape=jax.ShapeDtypeStruct((Mp, Cpad), jnp.float32),
            in_specs=[pl.BlockSpec((TM, Cpad), lambda m: (m, 0)),
                      pl.BlockSpec((1, Cpad), lambda m: (0, 0)),
                      pl.BlockSpec((1, Cpad), lambda m: (0, 0))],
            out_specs=pl.BlockSpec((TM, Cpad), lambda m: (m, 0)),
            compiler_params=pltpu.CompilerParams(
                dimension_semantics=("parallel",),
                vmem_limit_bytes=32 * 1024 * 1024),
        )(y, scale, shift)

    return y[:M, :Cout].reshape(N, Do, Ho, Wo, Cout)       # stays channels-last


# ----------------------------------------------------------------------------- params
def init_discriminator_params(key, in_channels, first_out_channels, n_layers=3):
    """Deterministic (PyTorch-shaped) parameter init. Returns list of layer dicts."""
    def conv_params(key, cout, cin, with_bias):
        kw_, kb_ = jax.random.split(key)
        fan_in = cin * KSIZE ** 3
        bound = 1.0 / (fan_in ** 0.5)
        w = jax.random.uniform(kw_, (cout, cin, KSIZE, KSIZE, KSIZE), jnp.float32, -bound, bound)
        b = jax.random.uniform(kb_, (cout,), jnp.float32, -bound, bound) if with_bias else None
        return w, b

    layers = []
    keys = jax.random.split(key, n_layers + 2)
    F = first_out_channels

    w, b = conv_params(keys[0], F, in_channels, True)
    layers.append(dict(w=w, b=b, stride=2, use_bn=False, use_lrelu=True))

    filt_mult, prev_mult = 1, 1
    for i in range(1, n_layers):
        prev_mult = filt_mult
        filt_mult = min(2 ** i, 8)
        w, b = conv_params(keys[i], F * filt_mult, F * prev_mult, False)
        layers.append(dict(w=w, b=b, stride=2, use_bn=True, use_lrelu=True))

    prev_mult = filt_mult
    filt_mult = min(2 ** n_layers, 8)
    w, b = conv_params(keys[n_layers], F * filt_mult, F * prev_mult, False)
    layers.append(dict(w=w, b=b, stride=1, use_bn=True, use_lrelu=True))

    w, b = conv_params(keys[n_layers + 1], 1, F * filt_mult, True)
    layers.append(dict(w=w, b=b, stride=1, use_bn=False, use_lrelu=False))
    return layers


def discriminator_forward(x, layers):
    # NCDHW -> NDHWC once; channels-last (lane-dense) inside the network.
    h = jnp.transpose(x, (0, 2, 3, 4, 1))
    for lyr in layers:
        h = conv_block(h, lyr["w"], lyr["b"],
                       stride=lyr["stride"], use_bn=lyr["use_bn"], use_lrelu=lyr["use_lrelu"])
    return jnp.transpose(h, (0, 4, 1, 2, 3))               # back to NCDHW


# ----------------------------------------------------------------------------- reference (pure JAX)
def _ref_forward(x, layers):
    h = x
    for lyr in layers:
        w, b, s = lyr["w"], lyr["b"], lyr["stride"]
        dn = jax.lax.conv_dimension_numbers(h.shape, w.shape, ("NCDHW", "OIDHW", "NCDHW"))
        h = jax.lax.conv_general_dilated(h, w, (s, s, s), [(PAD, PAD)] * 3, dimension_numbers=dn)
        if b is not None:
            h = h + b[None, :, None, None, None]
        if lyr["use_bn"]:
            mean = jnp.mean(h, axis=(0, 2, 3, 4), keepdims=True)
            var = jnp.mean((h - mean) ** 2, axis=(0, 2, 3, 4), keepdims=True)
            h = (h - mean) / jnp.sqrt(var + BN_EPS)
        if lyr["use_lrelu"]:
            h = jnp.where(h > 0, h, LRELU_SLOPE * h)
    return h


# ----------------------------------------------------------------------------- main
if __name__ == "__main__":
    key = jax.random.PRNGKey(0)
    k_x, k_p = jax.random.split(key)

    N, Cin, D, H, W = 2, 2, 8, 8, 8
    first_out_channels = 4

    x = jax.random.normal(k_x, (N, Cin, D, H, W), jnp.float32)
    layers = init_discriminator_params(k_p, Cin, first_out_channels, n_layers=3)

    fwd = jax.jit(lambda xx: discriminator_forward(xx, layers))
    out = jax.block_until_ready(fwd(x))

    ref = jax.block_until_ready(_ref_forward(x, layers))
    assert out.shape == ref.shape == (N, 1, 4, 4, 4), out.shape
    # bf16 matmul inputs (f32 accumulation) -> looser tolerance than the pure-f32 version
    assert jnp.allclose(out, ref, rtol=5e-2, atol=5e-2), float(jnp.max(jnp.abs(out - ref)))

    print("KERNEL_OK")
</pallas_src>

<mosaic_0001>
module attributes {stable_mosaic.version = 11 : i64} {
  func.func @_conv_matmul_kernel(%arg0: i32, %arg1: i32, %arg2: memref<256x128xbf16, #tpu.memory_space<vmem>>, %arg3: memref<128x128xbf16, #tpu.memory_space<vmem>>, %arg4: memref<1x128xf32, #tpu.memory_space<vmem>>, %arg5: memref<256x128xf32, #tpu.memory_space<vmem>>, %arg6: memref<256x128xf32, #tpu.memory_space<vmem>>) attributes {dimension_semantics = [#tpu.dimension_semantics<parallel>, #tpu.dimension_semantics<arbitrary>], iteration_bounds = array<i64: 1, 1>, scalar_prefetch = 0 : i64, scratch_operands = 1 : i64, tpu.core_type = #tpu.core_type<tc>, window_params = [{transform_indices = @transform_0, window_bounds = array<i64: 256, 128>}, {transform_indices = @transform_1, window_bounds = array<i64: 128, 128>}, {pipeline_mode = #tpu.pipeline_mode<synchronous>, transform_indices = @transform_2, window_bounds = array<i64: 1, 128>}, {transform_indices = @transform_3, window_bounds = array<i64: 256, 128>}]} {
    %c0_i32 = arith.constant 0 : i32
    %0 = arith.cmpi eq, %arg1, %c0_i32 : i32
    %1 = arith.extui %0 : i1 to i32
    %c0_i32_0 = arith.constant 0 : i32
    %2 = arith.cmpi ne, %1, %c0_i32_0 : i32
    scf.if %2 {
      %cst_10 = arith.constant 0.000000e+00 : f32
      %12 = vector.broadcast %cst_10 : f32 to vector<256x128xf32>
      %c0_11 = arith.constant 0 : index
      %c0_12 = arith.constant 0 : index
      %13 = vector.load %arg6[%c0_11, %c0_12] : memref<256x128xf32, #tpu.memory_space<vmem>>, vector<256x128xf32>
      tpu.vector_store %arg6[%c0_11, %c0_12], %12 {strides = array<i32>} : memref<256x128xf32, #tpu.memory_space<vmem>>, vector<256x128xf32>,
    } else {
    }
    %c0 = arith.constant 0 : index
    %c0_1 = arith.constant 0 : index
    %3 = vector.load %arg6[%c0, %c0_1] : memref<256x128xf32, #tpu.memory_space<vmem>>, vector<256x128xf32>
    %c0_2 = arith.constant 0 : index
    %c0_3 = arith.constant 0 : index
    %4 = vector.load %arg2[%c0_2, %c0_3] : memref<256x128xbf16, #tpu.memory_space<vmem>>, vector<256x128xbf16>
    %c0_4 = arith.constant 0 : index
    %c0_5 = arith.constant 0 : index
    %5 = vector.load %arg3[%c0_4, %c0_5] : memref<128x128xbf16, #tpu.memory_space<vmem>>, vector<128x128xbf16>
    %cst = arith.constant dense<0.000000e+00> : vector<256x128xf32>
    %6 = tpu.matmul %4, %5, %cst {dimension_numbers = #tpu.dot_dimension_numbers<[1], [0], [0], [1], [0, 0, 1, 1], [], []>} : vector<256x128xbf16>, vector<128x128xbf16>, vector<256x128xf32> -> vector<256x128xf32>
    %7 = arith.addf %3, %6 : vector<256x128xf32>
    %c0_6 = arith.constant 0 : index
    %c0_7 = arith.constant 0 : index
    %8 = vector.load %arg6[%c0_6, %c0_7] : memref<256x128xf32, #tpu.memory_space<vmem>>, vector<256x128xf32>
    tpu.vector_store %arg6[%c0_6, %c0_7], %7 {strides = array<i32>} : memref<256x128xf32, #tpu.memory_space<vmem>>, vector<256x128xf32>,
    %c0_i32_8 = arith.constant 0 : i32
    %9 = arith.cmpi eq, %arg1, %c0_i32_8 : i32
    %10 = arith.extui %9 : i1 to i32
    %c0_i32_9 = arith.constant 0 : i32
    %11 = arith.cmpi ne, %10, %c0_i32_9 : i32
    scf.if %11 {
      %c0_10 = arith.constant 0 : index
      %c0_11 = arith.constant 0 : index
      %12 = vector.load %arg6[%c0_10, %c0_11] : memref<256x128xf32, #tpu.memory_space<vmem>>, vector<256x128xf32>
      %c0_12 = arith.constant 0 : index
      %c0_13 = arith.constant 0 : index
      %13 = vector.load %arg4[%c0_12, %c0_13] : memref<1x128xf32, #tpu.memory_space<vmem>>, vector<1x128xf32>
      %14 = vector.broadcast %13 : vector<1x128xf32> to vector<256x128xf32>
      %15 = arith.addf %12, %14 : vector<256x128xf32>
      %cst_14 = arith.constant 0.000000e+00 : f32
      %16 = vector.broadcast %cst_14 : f32 to vector<256x128xf32>
      %17 = arith.cmpf ogt, %15, %16 : vector<256x128xf32>
      %cst_15 = arith.constant 2.000000e-01 : f32
      %18 = vector.broadcast %cst_15 : f32 to vector<256x128xf32>
      %19 = arith.mulf %18, %15 : vector<256x128xf32>
      %20 = arith.select %17, %15, %19 : vector<256x128xi1>, vector<256x128xf32>
      %c0_16 = arith.constant 0 : index
      %c0_17 = arith.constant 0 : index
      %21 = vector.load %arg5[%c0_16, %c0_17] : memref<256x128xf32, #tpu.memory_space<vmem>>, vector<256x128xf32>
      tpu.vector_store %arg5[%c0_16, %c0_17], %20 {strides = array<i32>} : memref<256x128xf32, #tpu.memory_space<vmem>>, vector<256x128xf32>,
    } else {
    }
    return
  }
  func.func @transform_0(%arg0: i32, %arg1: i32) -> (i32, i32) {
    %c0_i32 = arith.constant 0 : i32
    return %arg0, %arg1 : i32, i32
  }
  func.func @transform_1(%arg0: i32, %arg1: i32) -> (i32, i32) {
    %c0_i32 = arith.constant 0 : i32
    %c0_i32_0 = arith.constant 0 : i32
    return %arg1, %c0_i32 : i32, i32
  }
  func.func @transform_2(%arg0: i32, %arg1: i32) -> (i32, i32) {
    %c0_i32 = arith.constant 0 : i32
    %c0_i32_0 = arith.constant 0 : i32
    %c0_i32_1 = arith.constant 0 : i32
    return %c0_i32, %c0_i32_0 : i32, i32
  }
  func.func @transform_3(%arg0: i32, %arg1: i32) -> (i32, i32) {
    %c0_i32 = arith.constant 0 : i32
    %c0_i32_0 = arith.constant 0 : i32
    return %arg0, %c0_i32 : i32, i32
  }
}

module attributes {stable_mosaic.version = 11 : i64} {
  func.func @_conv_matmul_kernel(%arg0: i32, %arg1: i32, %arg2: memref<56x256xbf16, #tpu.memory_space<vmem>>, %arg3: memref<256x128xbf16, #tpu.memory_space<vmem>>, %arg4: memref<56x128xf32, #tpu.memory_space<vmem>>, %arg5: memref<8x128xf32, #tpu.memory_space<vmem>>, %arg6: memref<56x128xf32, #tpu.memory_space<vmem>>) attributes {dimension_semantics = [#tpu.dimension_semantics<parallel>, #tpu.dimension_semantics<arbitrary>], iteration_bounds = array<i64: 1, 1>, scalar_prefetch = 0 : i64, scratch_operands = 1 : i64, tpu.core_type = #tpu.core_type<tc>, window_params = [{transform_indices = @transform_0, window_bounds = array<i64: 56, 256>}, {transform_indices = @transform_1, window_bounds = array<i64: 256, 128>}, {transform_indices = @transform_2, window_bounds = array<i64: 56, 128>}, {transform_indices = @transform_3, window_bounds = array<i64: 8, 128>}]} {
    %c0_i32 = arith.constant 0 : i32
    %0 = arith.cmpi eq, %arg1, %c0_i32 : i32
    %1 = arith.extui %0 : i1 to i32
    %c0_i32_0 = arith.constant 0 : i32
    %2 = arith.cmpi ne, %1, %c0_i32_0 : i32
    scf.if %2 {
      %cst_10 = arith.constant 0.000000e+00 : f32
      %12 = vector.broadcast %cst_10 : f32 to vector<56x128xf32>
      %c0_11 = arith.constant 0 : index
      %c0_12 = arith.constant 0 : index
      %13 = vector.load %arg6[%c0_11, %c0_12] : memref<56x128xf32, #tpu.memory_space<vmem>>, vector<56x128xf32>
      tpu.vector_store %arg6[%c0_11, %c0_12], %12 {strides = array<i32>} : memref<56x128xf32, #tpu.memory_space<vmem>>, vector<56x128xf32>,
    } else {
    }
    %c0 = arith.constant 0 : index
    %c0_1 = arith.constant 0 : index
    %3 = vector.load %arg6[%c0, %c0_1] : memref<56x128xf32, #tpu.memory_space<vmem>>, vector<56x128xf32>
    %c0_2 = arith.constant 0 : index
    %c0_3 = arith.constant 0 : index
    %4 = vector.load %arg2[%c0_2, %c0_3] : memref<56x256xbf16, #tpu.memory_space<vmem>>, vector<56x256xbf16>
    %c0_4 = arith.constant 0 : index
    %c0_5 = arith.constant 0 : index
    %5 = vector.load %arg3[%c0_4, %c0_5] : memref<256x128xbf16, #tpu.memory_space<vmem>>, vector<256x128xbf16>
    %cst = arith.constant dense<0.000000e+00> : vector<56x128xf32>
    %6 = tpu.matmul %4, %5, %cst {dimension_numbers = #tpu.dot_dimension_numbers<[1], [0], [0], [1], [0, 0, 1, 1], [], []>} : vector<56x256xbf16>, vector<256x128xbf16>, vector<56x128xf32> -> vector<56x128xf32>
    %7 = arith.addf %3, %6 : vector<56x128xf32>
    %c0_6 = arith.constant 0 : index
    %c0_7 = arith.constant 0 : index
    %8 = vector.load %arg6[%c0_6, %c0_7] : memref<56x128xf32, #tpu.memory_space<vmem>>, vector<56x128xf32>
    tpu.vector_store %arg6[%c0_6, %c0_7], %7 {strides = array<i32>} : memref<56x128xf32, #tpu.memory_space<vmem>>, vector<56x128xf32>,
    %c0_i32_8 = arith.constant 0 : i32
    %9 = arith.cmpi eq, %arg1, %c0_i32_8 : i32
    %10 = arith.extui %9 : i1 to i32
    %c0_i32_9 = arith.constant 0 : i32
    %11 = arith.cmpi ne, %10, %c0_i32_9 : i32
    scf.if %11 {
      %c0_10 = arith.constant 0 : index
      %c0_11 = arith.constant 0 : index
      %12 = vector.load %arg6[%c0_10, %c0_11] : memref<56x128xf32, #tpu.memory_space<vmem>>, vector<56x128xf32>
      %cst_12 = arith.constant dense<0.000000e+00> : vector<128xf32>
      %13 = vector.multi_reduction <add>, %12, %cst_12 [0] : vector<56x128xf32> to vector<128xf32>
      %14 = vector.shape_cast %13 : vector<128xf32> to vector<1x128xf32>
      %15 = arith.mulf %12, %12 : vector<56x128xf32>
      %cst_13 = arith.constant dense<0.000000e+00> : vector<128xf32>
      %16 = vector.multi_reduction <add>, %15, %cst_13 [0] : vector<56x128xf32> to vector<128xf32>
      %17 = vector.shape_cast %16 : vector<128xf32> to vector<1x128xf32>
      %18 = tpu.iota {dimensions = array<i32: 0>} : vector<8x128xi32>
      %c0_i32_14 = arith.constant 0 : i32
      %19 = vector.broadcast %c0_i32_14 : i32 to vector<8x128xi32>
      %20 = arith.cmpi eq, %18, %19 : vector<8x128xi32>
      %c1_i32 = arith.constant 1 : i32
      %21 = vector.broadcast %c1_i32 : i32 to vector<8x128xi32>
      %22 = arith.cmpi eq, %18, %21 : vector<8x128xi32>
      %cst_15 = arith.constant 0.000000e+00 : f32
      %23 = vector.shape_cast %17 : vector<1x128xf32> to vector<1x128xf32>
      %24 = vector.broadcast %23 : vector<1x128xf32> to vector<8x128xf32>
      %25 = vector.broadcast %cst_15 : f32 to vector<8x128xf32>
      %26 = arith.select %22, %24, %25 : vector<8x128xi1>, vector<8x128xf32>
      %27 = vector.shape_cast %14 : vector<1x128xf32> to vector<1x128xf32>
      %28 = vector.broadcast %27 : vector<1x128xf32> to vector<8x128xf32>
      %29 = arith.select %20, %28, %26 : vector<8x128xi1>, vector<8x128xf32>
      %c0_16 = arith.constant 0 : index
      %c0_17 = arith.constant 0 : index
      %30 = vector.load %arg5[%c0_16, %c0_17] : memref<8x128xf32, #tpu.memory_space<vmem>>, vector<8x128xf32>
      tpu.vector_store %arg5[%c0_16, %c0_17], %29 {strides = array<i32>} : memref<8x128xf32, #tpu.memory_space<vmem>>, vector<8x128xf32>,
      %c0_18 = arith.constant 0 : index
      %c0_19 = arith.constant 0 : index
      %31 = vector.load %arg4[%c0_18, %c0_19] : memref<56x128xf32, #tpu.memory_space<vmem>>, vector<56x128xf32>
      tpu.vector_store %arg4[%c0_18, %c0_19], %12 {strides = array<i32>} : memref<56x128xf32, #tpu.memory_space<vmem>>, vector<56x128xf32>,
    } else {
    }
    return
  }
  func.func @transform_0(%arg0: i32, %arg1: i32) -> (i32, i32) {
    %c0_i32 = arith.constant 0 : i32
    return %arg0, %arg1 : i32, i32
  }
  func.func @transform_1(%arg0: i32, %arg1: i32) -> (i32, i32) {
    %c0_i32 = arith.constant 0 : i32
    %c0_i32_0 = arith.constant 0 : i32
    return %arg1, %c0_i32 : i32, i32
  }
  func.func @transform_2(%arg0: i32, %arg1: i32) -> (i32, i32) {
    %c0_i32 = arith.constant 0 : i32
    %c0_i32_0 = arith.constant 0 : i32
    return %arg0, %c0_i32 : i32, i32
  }
  func.func @transform_3(%arg0: i32, %arg1: i32) -> (i32, i32) {
    %c0_i32 = arith.constant 0 : i32
    %c0_i32_0 = arith.constant 0 : i32
    return %arg0, %c0_i32 : i32, i32
  }
}

module attributes {stable_mosaic.version = 11 : i64} {
  func.func @_bn_apply_kernel(%arg0: i32, %arg1: memref<56x128xf32, #tpu.memory_space<vmem>>, %arg2: memref<1x128xf32, #tpu.memory_space<vmem>>, %arg3: memref<1x128xf32, #tpu.memory_space<vmem>>, %arg4: memref<56x128xf32, #tpu.memory_space<vmem>>) attributes {dimension_semantics = [#tpu.dimension_semantics<parallel>], iteration_bounds = array<i64: 1>, scalar_prefetch = 0 : i64, scratch_operands = 0 : i64, tpu.core_type = #tpu.core_type<tc>, window_params = [{transform_indices = @transform_0, window_bounds = array<i64: 56, 128>}, {pipeline_mode = #tpu.pipeline_mode<synchronous>, transform_indices = @transform_1, window_bounds = array<i64: 1, 128>}, {pipeline_mode = #tpu.pipeline_mode<synchronous>, transform_indices = @transform_2, window_bounds = array<i64: 1, 128>}, {transform_indices = @transform_3, window_bounds = array<i64: 56, 128>}]} {
    %c0 = arith.constant 0 : index
    %c0_0 = arith.constant 0 : index
    %0 = vector.load %arg1[%c0, %c0_0] : memref<56x128xf32, #tpu.memory_space<vmem>>, vector<56x128xf32>
    %c0_1 = arith.constant 0 : index
    %c0_2 = arith.constant 0 : index
    %1 = vector.load %arg2[%c0_1, %c0_2] : memref<1x128xf32, #tpu.memory_space<vmem>>, vector<1x128xf32>
    %2 = vector.broadcast %1 : vector<1x128xf32> to vector<56x128xf32>
    %3 = arith.mulf %0, %2 : vector<56x128xf32>
    %c0_3 = arith.constant 0 : index
    %c0_4 = arith.constant 0 : index
    %4 = vector.load %arg3[%c0_3, %c0_4] : memref<1x128xf32, #tpu.memory_space<vmem>>, vector<1x128xf32>
    %5 = vector.broadcast %4 : vector<1x128xf32> to vector<56x128xf32>
    %6 = arith.addf %3, %5 : vector<56x128xf32>
    %cst = arith.constant 0.000000e+00 : f32
    %7 = vector.broadcast %cst : f32 to vector<56x128xf32>
    %8 = arith.cmpf ogt, %6, %7 : vector<56x128xf32>
    %cst_5 = arith.constant 2.000000e-01 : f32
    %9 = vector.broadcast %cst_5 : f32 to vector<56x128xf32>
    %10 = arith.mulf %9, %6 : vector<56x128xf32>
    %11 = arith.select %8, %6, %10 : vector<56x128xi1>, vector<56x128xf32>
    %c0_6 = arith.constant 0 : index
    %c0_7 = arith.constant 0 : index
    %12 = vector.load %arg4[%c0_6, %c0_7] : memref<56x128xf32, #tpu.memory_space<vmem>>, vector<56x128xf32>
    tpu.vector_store %arg4[%c0_6, %c0_7], %11 {strides = array<i32>} : memref<56x128xf32, #tpu.memory_space<vmem>>, vector<56x128xf32>,
    return
  }
  func.func @transform_0(%arg0: i32) -> (i32, i32) {
    %c0_i32 = arith.constant 0 : i32
    %c0_i32_0 = arith.constant 0 : i32
    return %arg0, %c0_i32 : i32, i32
  }
  func.func @transform_1(%arg0: i32) -> (i32, i32) {
    %c0_i32 = arith.constant 0 : i32
    %c0_i32_0 = arith.constant 0 : i32
    %c0_i32_1 = arith.constant 0 : i32
    return %c0_i32, %c0_i32_0 : i32, i32
  }
  func.func @transform_2(%arg0: i32) -> (i32, i32) {
    %c0_i32 = arith.constant 0 : i32
    %c0_i32_0 = arith.constant 0 : i32
    %c0_i32_1 = arith.constant 0 : i32
    return %c0_i32, %c0_i32_0 : i32, i32
  }
  func.func @transform_3(%arg0: i32) -> (i32, i32) {
    %c0_i32 = arith.constant 0 : i32
    %c0_i32_0 = arith.constant 0 : i32
    return %arg0, %c0_i32 : i32, i32
  }
}

module attributes {stable_mosaic.version = 11 : i64} {
  func.func @_conv_matmul_kernel(%arg0: i32, %arg1: i32, %arg2: memref<16x512xbf16, #tpu.memory_space<vmem>>, %arg3: memref<512x128xbf16, #tpu.memory_space<vmem>>, %arg4: memref<16x128xf32, #tpu.memory_space<vmem>>, %arg5: memref<8x128xf32, #tpu.memory_space<vmem>>, %arg6: memref<16x128xf32, #tpu.memory_space<vmem>>) attributes {dimension_semantics = [#tpu.dimension_semantics<parallel>, #tpu.dimension_semantics<arbitrary>], iteration_bounds = array<i64: 1, 1>, scalar_prefetch = 0 : i64, scratch_operands = 1 : i64, tpu.core_type = #tpu.core_type<tc>, window_params = [{transform_indices = @transform_0, window_bounds = array<i64: 16, 512>}, {transform_indices = @transform_1, window_bounds = array<i64: 512, 128>}, {transform_indices = @transform_2, window_bounds = array<i64: 16, 128>}, {transform_indices = @transform_3, window_bounds = array<i64: 8, 128>}]} {
    %c0_i32 = arith.constant 0 : i32
    %0 = arith.cmpi eq, %arg1, %c0_i32 : i32
    %1 = arith.extui %0 : i1 to i32
    %c0_i32_0 = arith.constant 0 : i32
    %2 = arith.cmpi ne, %1, %c0_i32_0 : i32
    scf.if %2 {
      %cst_10 = arith.constant 0.000000e+00 : f32
      %12 = vector.broadcast %cst_10 : f32 to vector<16x128xf32>
      %c0_11 = arith.constant 0 : index
      %c0_12 = arith.constant 0 : index
      %13 = vector.load %arg6[%c0_11, %c0_12] : memref<16x128xf32, #tpu.memory_space<vmem>>, vector<16x128xf32>
      tpu.vector_store %arg6[%c0_11, %c0_12], %12 {strides = array<i32>} : memref<16x128xf32, #tpu.memory_space<vmem>>, vector<16x128xf32>,
    } else {
    }
    %c0 = arith.constant 0 : index
    %c0_1 = arith.constant 0 : index
    %3 = vector.load %arg6[%c0, %c0_1] : memref<16x128xf32, #tpu.memory_space<vmem>>, vector<16x128xf32>
    %c0_2 = arith.constant 0 : index
    %c0_3 = arith.constant 0 : index
    %4 = vector.load %arg2[%c0_2, %c0_3] : memref<16x512xbf16, #tpu.memory_space<vmem>>, vector<16x512xbf16>
    %c0_4 = arith.constant 0 : index
    %c0_5 = arith.constant 0 : index
    %5 = vector.load %arg3[%c0_4, %c0_5] : memref<512x128xbf16, #tpu.memory_space<vmem>>, vector<512x128xbf16>
    %cst = arith.constant dense<0.000000e+00> : vector<16x128xf32>
    %6 = tpu.matmul %4, %5, %cst {dimension_numbers = #tpu.dot_dimension_numbers<[1], [0], [0], [1], [0, 0, 1, 1], [], []>} : vector<16x512xbf16>, vector<512x128xbf16>, vector<16x128xf32> -> vector<16x128xf32>
    %7 = arith.addf %3, %6 : vector<16x128xf32>
    %c0_6 = arith.constant 0 : index
    %c0_7 = arith.constant 0 : index
    %8 = vector.load %arg6[%c0_6, %c0_7] : memref<16x128xf32, #tpu.memory_space<vmem>>, vector<16x128xf32>
    tpu.vector_store %arg6[%c0_6, %c0_7], %7 {strides = array<i32>} : memref<16x128xf32, #tpu.memory_space<vmem>>, vector<16x128xf32>,
    %c0_i32_8 = arith.constant 0 : i32
    %9 = arith.cmpi eq, %arg1, %c0_i32_8 : i32
    %10 = arith.extui %9 : i1 to i32
    %c0_i32_9 = arith.constant 0 : i32
    %11 = arith.cmpi ne, %10, %c0_i32_9 : i32
    scf.if %11 {
      %c0_10 = arith.constant 0 : index
      %c0_11 = arith.constant 0 : index
      %12 = vector.load %arg6[%c0_10, %c0_11] : memref<16x128xf32, #tpu.memory_space<vmem>>, vector<16x128xf32>
      %cst_12 = arith.constant dense<0.000000e+00> : vector<128xf32>
      %13 = vector.multi_reduction <add>, %12, %cst_12 [0] : vector<16x128xf32> to vector<128xf32>
      %14 = vector.shape_cast %13 : vector<128xf32> to vector<1x128xf32>
      %15 = arith.mulf %12, %12 : vector<16x128xf32>
      %cst_13 = arith.constant dense<0.000000e+00> : vector<128xf32>
      %16 = vector.multi_reduction <add>, %15, %cst_13 [0] : vector<16x128xf32> to vector<128xf32>
      %17 = vector.shape_cast %16 : vector<128xf32> to vector<1x128xf32>
      %18 = tpu.iota {dimensions = array<i32: 0>} : vector<8x128xi32>
      %c0_i32_14 = arith.constant 0 : i32
      %19 = vector.broadcast %c0_i32_14 : i32 to vector<8x128xi32>
      %20 = arith.cmpi eq, %18, %19 : vector<8x128xi32>
      %c1_i32 = arith.constant 1 : i32
      %21 = vector.broadcast %c1_i32 : i32 to vector<8x128xi32>
      %22 = arith.cmpi eq, %18, %21 : vector<8x128xi32>
      %cst_15 = arith.constant 0.000000e+00 : f32
      %23 = vector.shape_cast %17 : vector<1x128xf32> to vector<1x128xf32>
      %24 = vector.broadcast %23 : vector<1x128xf32> to vector<8x128xf32>
      %25 = vector.broadcast %cst_15 : f32 to vector<8x128xf32>
      %26 = arith.select %22, %24, %25 : vector<8x128xi1>, vector<8x128xf32>
      %27 = vector.shape_cast %14 : vector<1x128xf32> to vector<1x128xf32>
      %28 = vector.broadcast %27 : vector<1x128xf32> to vector<8x128xf32>
      %29 = arith.select %20, %28, %26 : vector<8x128xi1>, vector<8x128xf32>
      %c0_16 = arith.constant 0 : index
      %c0_17 = arith.constant 0 : index
      %30 = vector.load %arg5[%c0_16, %c0_17] : memref<8x128xf32, #tpu.memory_space<vmem>>, vector<8x128xf32>
      tpu.vector_store %arg5[%c0_16, %c0_17], %29 {strides = array<i32>} : memref<8x128xf32, #tpu.memory_space<vmem>>, vector<8x128xf32>,
      %c0_18 = arith.constant 0 : index
      %c0_19 = arith.constant 0 : index
      %31 = vector.load %arg4[%c0_18, %c0_19] : memref<16x128xf32, #tpu.memory_space<vmem>>, vector<16x128xf32>
      tpu.vector_store %arg4[%c0_18, %c0_19], %12 {strides = array<i32>} : memref<16x128xf32, #tpu.memory_space<vmem>>, vector<16x128xf32>,
    } else {
    }
    return
  }
  func.func @transform_0(%arg0: i32, %arg1: i32) -> (i32, i32) {
    %c0_i32 = arith.constant 0 : i32
    return %arg0, %arg1 : i32, i32
  }
  func.func @transform_1(%arg0: i32, %arg1: i32) -> (i32, i32) {
    %c0_i32 = arith.constant 0 : i32
    %c0_i32_0 = arith.constant 0 : i32
    return %arg1, %c0_i32 : i32, i32
  }
  func.func @transform_2(%arg0: i32, %arg1: i32) -> (i32, i32) {
    %c0_i32 = arith.constant 0 : i32
    %c0_i32_0 = arith.constant 0 : i32
    return %arg0, %c0_i32 : i32, i32
  }
  func.func @transform_3(%arg0: i32, %arg1: i32) -> (i32, i32) {
    %c0_i32 = arith.constant 0 : i32
    %c0_i32_0 = arith.constant 0 : i32
    return %arg0, %c0_i32 : i32, i32
  }
}

module attributes {stable_mosaic.version = 11 : i64} {
  func.func @_bn_apply_kernel(%arg0: i32, %arg1: memref<16x128xf32, #tpu.memory_space<vmem>>, %arg2: memref<1x128xf32, #tpu.memory_space<vmem>>, %arg3: memref<1x128xf32, #tpu.memory_space<vmem>>, %arg4: memref<16x128xf32, #tpu.memory_space<vmem>>) attributes {dimension_semantics = [#tpu.dimension_semantics<parallel>], iteration_bounds = array<i64: 1>, scalar_prefetch = 0 : i64, scratch_operands = 0 : i64, tpu.core_type = #tpu.core_type<tc>, window_params = [{transform_indices = @transform_0, window_bounds = array<i64: 16, 128>}, {pipeline_mode = #tpu.pipeline_mode<synchronous>, transform_indices = @transform_1, window_bounds = array<i64: 1, 128>}, {pipeline_mode = #tpu.pipeline_mode<synchronous>, transform_indices = @transform_2, window_bounds = array<i64: 1, 128>}, {transform_indices = @transform_3, window_bounds = array<i64: 16, 128>}]} {
    %c0 = arith.constant 0 : index
    %c0_0 = arith.constant 0 : index
    %0 = vector.load %arg1[%c0, %c0_0] : memref<16x128xf32, #tpu.memory_space<vmem>>, vector<16x128xf32>
    %c0_1 = arith.constant 0 : index
    %c0_2 = arith.constant 0 : index
    %1 = vector.load %arg2[%c0_1, %c0_2] : memref<1x128xf32, #tpu.memory_space<vmem>>, vector<1x128xf32>
    %2 = vector.broadcast %1 : vector<1x128xf32> to vector<16x128xf32>
    %3 = arith.mulf %0, %2 : vector<16x128xf32>
    %c0_3 = arith.constant 0 : index
    %c0_4 = arith.constant 0 : index
    %4 = vector.load %arg3[%c0_3, %c0_4] : memref<1x128xf32, #tpu.memory_space<vmem>>, vector<1x128xf32>
    %5 = vector.broadcast %4 : vector<1x128xf32> to vector<16x128xf32>
    %6 = arith.addf %3, %5 : vector<16x128xf32>
    %cst = arith.constant 0.000000e+00 : f32
    %7 = vector.broadcast %cst : f32 to vector<16x128xf32>
    %8 = arith.cmpf ogt, %6, %7 : vector<16x128xf32>
    %cst_5 = arith.constant 2.000000e-01 : f32
    %9 = vector.broadcast %cst_5 : f32 to vector<16x128xf32>
    %10 = arith.mulf %9, %6 : vector<16x128xf32>
    %11 = arith.select %8, %6, %10 : vector<16x128xi1>, vector<16x128xf32>
    %c0_6 = arith.constant 0 : index
    %c0_7 = arith.constant 0 : index
    %12 = vector.load %arg4[%c0_6, %c0_7] : memref<16x128xf32, #tpu.memory_space<vmem>>, vector<16x128xf32>
    tpu.vector_store %arg4[%c0_6, %c0_7], %11 {strides = array<i32>} : memref<16x128xf32, #tpu.memory_space<vmem>>, vector<16x128xf32>,
    return
  }
  func.func @transform_0(%arg0: i32) -> (i32, i32) {
    %c0_i32 = arith.constant 0 : i32
    %c0_i32_0 = arith.constant 0 : i32
    return %arg0, %c0_i32 : i32, i32
  }
  func.func @transform_1(%arg0: i32) -> (i32, i32) {
    %c0_i32 = arith.constant 0 : i32
    %c0_i32_0 = arith.constant 0 : i32
    %c0_i32_1 = arith.constant 0 : i32
    return %c0_i32, %c0_i32_0 : i32, i32
  }
  func.func @transform_2(%arg0: i32) -> (i32, i32) {
    %c0_i32 = arith.constant 0 : i32
    %c0_i32_0 = arith.constant 0 : i32
    %c0_i32_1 = arith.constant 0 : i32
    return %c0_i32, %c0_i32_0 : i32, i32
  }
  func.func @transform_3(%arg0: i32) -> (i32, i32) {
    %c0_i32 = arith.constant 0 : i32
    %c0_i32_0 = arith.constant 0 : i32
    return %arg0, %c0_i32 : i32, i32
  }
}

module attributes {stable_mosaic.version = 11 : i64} {
  func.func @_conv_matmul_kernel(%arg0: i32, %arg1: i32, %arg2: memref<56x512xbf16, #tpu.memory_space<vmem>>, %arg3: memref<512x128xbf16, #tpu.memory_space<vmem>>, %arg4: memref<56x128xf32, #tpu.memory_space<vmem>>, %arg5: memref<8x128xf32, #tpu.memory_space<vmem>>, %arg6: memref<56x128xf32, #tpu.memory_space<vmem>>) attributes {dimension_semantics = [#tpu.dimension_semantics<parallel>, #tpu.dimension_semantics<arbitrary>], iteration_bounds = array<i64: 1, 2>, scalar_prefetch = 0 : i64, scratch_operands = 1 : i64, tpu.core_type = #tpu.core_type<tc>, window_params = [{transform_indices = @transform_0, window_bounds = array<i64: 56, 512>}, {transform_indices = @transform_1, window_bounds = array<i64: 512, 128>}, {transform_indices = @transform_2, window_bounds = array<i64: 56, 128>}, {transform_indices = @transform_3, window_bounds = array<i64: 8, 128>}]} {
    %c0_i32 = arith.constant 0 : i32
    %0 = arith.cmpi eq, %arg1, %c0_i32 : i32
    %1 = arith.extui %0 : i1 to i32
    %c0_i32_0 = arith.constant 0 : i32
    %2 = arith.cmpi ne, %1, %c0_i32_0 : i32
    scf.if %2 {
      %cst_9 = arith.constant 0.000000e+00 : f32
      %12 = vector.broadcast %cst_9 : f32 to vector<56x128xf32>
      %c0_10 = arith.constant 0 : index
      %c0_11 = arith.constant 0 : index
      %13 = vector.load %arg6[%c0_10, %c0_11] : memref<56x128xf32, #tpu.memory_space<vmem>>, vector<56x128xf32>
      tpu.vector_store %arg6[%c0_10, %c0_11], %12 {strides = array<i32>} : memref<56x128xf32, #tpu.memory_space<vmem>>, vector<56x128xf32>,
    } else {
    }
    %c0 = arith.constant 0 : index
    %c0_1 = arith.constant 0 : index
    %3 = vector.load %arg6[%c0, %c0_1] : memref<56x128xf32, #tpu.memory_space<vmem>>, vector<56x128xf32>
    %c0_2 = arith.constant 0 : index
    %c0_3 = arith.constant 0 : index
    %4 = vector.load %arg2[%c0_2, %c0_3] : memref<56x512xbf16, #tpu.memory_space<vmem>>, vector<56x512xbf16>
    %c0_4 = arith.constant 0 : index
    %c0_5 = arith.constant 0 : index
    %5 = vector.load %arg3[%c0_4, %c0_5] : memref<512x128xbf16, #tpu.memory_space<vmem>>, vector<512x128xbf16>
    %cst = arith.constant dense<0.000000e+00> : vector<56x128xf32>
    %6 = tpu.matmul %4, %5, %cst {dimension_numbers = #tpu.dot_dimension_numbers<[1], [0], [0], [1], [0, 0, 1, 1], [], []>} : vector<56x512xbf16>, vector<512x128xbf16>, vector<56x128xf32> -> vector<56x128xf32>
    %7 = arith.addf %3, %6 : vector<56x128xf32>
    %c0_6 = arith.constant 0 : index
    %c0_7 = arith.constant 0 : index
    %8 = vector.load %arg6[%c0_6, %c0_7] : memref<56x128xf32, #tpu.memory_space<vmem>>, vector<56x128xf32>
    tpu.vector_store %arg6[%c0_6, %c0_7], %7 {strides = array<i32>} : memref<56x128xf32, #tpu.memory_space<vmem>>, vector<56x128xf32>,
    %c1_i32 = arith.constant 1 : i32
    %9 = arith.cmpi eq, %arg1, %c1_i32 : i32
    %10 = arith.extui %9 : i1 to i32
    %c0_i32_8 = arith.constant 0 : i32
    %11 = arith.cmpi ne, %10, %c0_i32_8 : i32
    scf.if %11 {
      %c0_9 = arith.constant 0 : index
      %c0_10 = arith.constant 0 : index
      %12 = vector.load %arg6[%c0_9, %c0_10] : memref<56x128xf32, #tpu.memory_space<vmem>>, vector<56x128xf32>
      %cst_11 = arith.constant dense<0.000000e+00> : vector<128xf32>
      %13 = vector.multi_reduction <add>, %12, %cst_11 [0] : vector<56x128xf32> to vector<128xf32>
      %14 = vector.shape_cast %13 : vector<128xf32> to vector<1x128xf32>
      %15 = arith.mulf %12, %12 : vector<56x128xf32>
      %cst_12 = arith.constant dense<0.000000e+00> : vector<128xf32>
      %16 = vector.multi_reduction <add>, %15, %cst_12 [0] : vector<56x128xf32> to vector<128xf32>
      %17 = vector.shape_cast %16 : vector<128xf32> to vector<1x128xf32>
      %18 = tpu.iota {dimensions = array<i32: 0>} : vector<8x128xi32>
      %c0_i32_13 = arith.constant 0 : i32
      %19 = vector.broadcast %c0_i32_13 : i32 to vector<8x128xi32>
      %20 = arith.cmpi eq, %18, %19 : vector<8x128xi32>
      %c1_i32_14 = arith.constant 1 : i32
      %21 = vector.broadcast %c1_i32_14 : i32 to vector<8x128xi32>
      %22 = arith.cmpi eq, %18, %21 : vector<8x128xi32>
      %cst_15 = arith.constant 0.000000e+00 : f32
      %23 = vector.shape_cast %17 : vector<1x128xf32> to vector<1x128xf32>
      %24 = vector.broadcast %23 : vector<1x128xf32> to vector<8x128xf32>
      %25 = vector.broadcast %cst_15 : f32 to vector<8x128xf32>
      %26 = arith.select %22, %24, %25 : vector<8x128xi1>, vector<8x128xf32>
      %27 = vector.shape_cast %14 : vector<1x128xf32> to vector<1x128xf32>
      %28 = vector.broadcast %27 : vector<1x128xf32> to vector<8x128xf32>
      %29 = arith.select %20, %28, %26 : vector<8x128xi1>, vector<8x128xf32>
      %c0_16 = arith.constant 0 : index
      %c0_17 = arith.constant 0 : index
      %30 = vector.load %arg5[%c0_16, %c0_17] : memref<8x128xf32, #tpu.memory_space<vmem>>, vector<8x128xf32>
      tpu.vector_store %arg5[%c0_16, %c0_17], %29 {strides = array<i32>} : memref<8x128xf32, #tpu.memory_space<vmem>>, vector<8x128xf32>,
      %c0_18 = arith.constant 0 : index
      %c0_19 = arith.constant 0 : index
      %31 = vector.load %arg4[%c0_18, %c0_19] : memref<56x128xf32, #tpu.memory_space<vmem>>, vector<56x128xf32>
      tpu.vector_store %arg4[%c0_18, %c0_19], %12 {strides = array<i32>} : memref<56x128xf32, #tpu.memory_space<vmem>>, vector<56x128xf32>,
    } else {
    }
    return
  }
  func.func @transform_0(%arg0: i32, %arg1: i32) -> (i32, i32) {
    %c0_i32 = arith.constant 0 : i32
    return %arg0, %arg1 : i32, i32
  }
  func.func @transform_1(%arg0: i32, %arg1: i32) -> (i32, i32) {
    %c0_i32 = arith.constant 0 : i32
    %c0_i32_0 = arith.constant 0 : i32
    return %arg1, %c0_i32 : i32, i32
  }
  func.func @transform_2(%arg0: i32, %arg1: i32) -> (i32, i32) {
    %c0_i32 = arith.constant 0 : i32
    %c0_i32_0 = arith.constant 0 : i32
    return %arg0, %c0_i32 : i32, i32
  }
  func.func @transform_3(%arg0: i32, %arg1: i32) -> (i32, i32) {
    %c0_i32 = arith.constant 0 : i32
    %c0_i32_0 = arith.constant 0 : i32
    return %arg0, %c0_i32 : i32, i32
  }
}

module attributes {stable_mosaic.version = 11 : i64} {
  func.func @_conv_matmul_kernel(%arg0: i32, %arg1: i32, %arg2: memref<128x512xbf16, #tpu.memory_space<vmem>>, %arg3: memref<512x128xbf16, #tpu.memory_space<vmem>>, %arg4: memref<1x128xf32, #tpu.memory_space<vmem>>, %arg5: memref<128x128xf32, #tpu.memory_space<vmem>>, %arg6: memref<128x128xf32, #tpu.memory_space<vmem>>) attributes {dimension_semantics = [#tpu.dimension_semantics<parallel>, #tpu.dimension_semantics<arbitrary>], iteration_bounds = array<i64: 1, 4>, scalar_prefetch = 0 : i64, scratch_operands = 1 : i64, tpu.core_type = #tpu.core_type<tc>, window_params = [{transform_indices = @transform_0, window_bounds = array<i64: 128, 512>}, {transform_indices = @transform_1, window_bounds = array<i64: 512, 128>}, {pipeline_mode = #tpu.pipeline_mode<synchronous>, transform_indices = @transform_2, window_bounds = array<i64: 1, 128>}, {transform_indices = @transform_3, window_bounds = array<i64: 128, 128>}]} {
    %c0_i32 = arith.constant 0 : i32
    %0 = arith.cmpi eq, %arg1, %c0_i32 : i32
    %1 = arith.extui %0 : i1 to i32
    %c0_i32_0 = arith.constant 0 : i32
    %2 = arith.cmpi ne, %1, %c0_i32_0 : i32
    scf.if %2 {
      %cst_9 = arith.constant 0.000000e+00 : f32
      %12 = vector.broadcast %cst_9 : f32 to vector<128x128xf32>
      %c0_10 = arith.constant 0 : index
      %c0_11 = arith.constant 0 : index
      %13 = vector.load %arg6[%c0_10, %c0_11] : memref<128x128xf32, #tpu.memory_space<vmem>>, vector<128x128xf32>
      tpu.vector_store %arg6[%c0_10, %c0_11], %12 {strides = array<i32>} : memref<128x128xf32, #tpu.memory_space<vmem>>, vector<128x128xf32>,
    } else {
    }
    %c0 = arith.constant 0 : index
    %c0_1 = arith.constant 0 : index
    %3 = vector.load %arg6[%c0, %c0_1] : memref<128x128xf32, #tpu.memory_space<vmem>>, vector<128x128xf32>
    %c0_2 = arith.constant 0 : index
    %c0_3 = arith.constant 0 : index
    %4 = vector.load %arg2[%c0_2, %c0_3] : memref<128x512xbf16, #tpu.memory_space<vmem>>, vector<128x512xbf16>
    %c0_4 = arith.constant 0 : index
    %c0_5 = arith.constant 0 : index
    %5 = vector.load %arg3[%c0_4, %c0_5] : memref<512x128xbf16, #tpu.memory_space<vmem>>, vector<512x128xbf16>
    %cst = arith.constant dense<0.000000e+00> : vector<128x128xf32>
    %6 = tpu.matmul %4, %5, %cst {dimension_numbers = #tpu.dot_dimension_numbers<[1], [0], [0], [1], [0, 0, 1, 1], [], []>} : vector<128x512xbf16>, vector<512x128xbf16>, vector<128x128xf32> -> vector<128x128xf32>
    %7 = arith.addf %3, %6 : vector<128x128xf32>
    %c0_6 = arith.constant 0 : index
    %c0_7 = arith.constant 0 : index
    %8 = vector.load %arg6[%c0_6, %c0_7] : memref<128x128xf32, #tpu.memory_space<vmem>>, vector<128x128xf32>
    tpu.vector_store %arg6[%c0_6, %c0_7], %7 {strides = array<i32>} : memref<128x128xf32, #tpu.memory_space<vmem>>, vector<128x128xf32>,
    %c3_i32 = arith.constant 3 : i32
    %9 = arith.cmpi eq, %arg1, %c3_i32 : i32
    %10 = arith.extui %9 : i1 to i32
    %c0_i32_8 = arith.constant 0 : i32
    %11 = arith.cmpi ne, %10, %c0_i32_8 : i32
    scf.if %11 {
      %c0_9 = arith.constant 0 : index
      %c0_10 = arith.constant 0 : index
      %12 = vector.load %arg6[%c0_9, %c0_10] : memref<128x128xf32, #tpu.memory_space<vmem>>, vector<128x128xf32>
      %c0_11 = arith.constant 0 : index
      %c0_12 = arith.constant 0 : index
      %13 = vector.load %arg4[%c0_11, %c0_12] : memref<1x128xf32, #tpu.memory_space<vmem>>, vector<1x128xf32>
      %14 = vector.broadcast %13 : vector<1x128xf32> to vector<128x128xf32>
      %15 = arith.addf %12, %14 : vector<128x128xf32>
      %c0_13 = arith.constant 0 : index
      %c0_14 = arith.constant 0 : index
      %16 = vector.load %arg5[%c0_13, %c0_14] : memref<128x128xf32, #tpu.memory_space<vmem>>, vector<128x128xf32>
      tpu.vector_store %arg5[%c0_13, %c0_14], %15 {strides = array<i32>} : memref<128x128xf32, #tpu.memory_space<vmem>>, vector<128x128xf32>,
    } else {
    }
    return
  }
  func.func @transform_0(%arg0: i32, %arg1: i32) -> (i32, i32) {
    %c0_i32 = arith.constant 0 : i32
    return %arg0, %arg1 : i32, i32
  }
  func.func @transform_1(%arg0: i32, %arg1: i32) -> (i32, i32) {
    %c0_i32 = arith.constant 0 : i32
    %c0_i32_0 = arith.constant 0 : i32
    return %arg1, %c0_i32 : i32, i32
  }
  func.func @transform_2(%arg0: i32, %arg1: i32) -> (i32, i32) {
    %c0_i32 = arith.constant 0 : i32
    %c0_i32_0 = arith.constant 0 : i32
    %c0_i32_1 = arith.constant 0 : i32
    return %c0_i32, %c0_i32_0 : i32, i32
  }
  func.func @transform_3(%arg0: i32, %arg1: i32) -> (i32, i32) {
    %c0_i32 = arith.constant 0 : i32
    %c0_i32_0 = arith.constant 0 : i32
    return %arg0, %c0_i32 : i32, i32
  }
}

</mosaic_0001>

<bundles_post_ra>
// kernel: _lambda_.8
= control target key start
LH: loop header
LB: loop body
LE: loop exit
PB: predicated region body
PF: predicated region fallthrough
CT: control target
= control target key end

     0   :  { %s1000_s1 = inlined_call_operand.vmem [shape: bf16[128,128], index: 1, kind: input, shape index: {}]   ;;  %s1001_s2 = inlined_call_operand.vmem [shape: f32[1,128], index: 2, kind: input, shape index: {}]   ;;  %s1002_s0 = inlined_call_operand.vmem [shape: bf16[256,128], index: 0, kind: input, shape index: {}]   ;;  %s1003_s3 = inlined_call_operand.vmem [shape: f32[256,128], index: 3, kind: output, shape index: {}]  }
   0x1   :  { %v749_v0 = vld [vmem:[%s1000_s1 + $0x38] sm:$0xff]  ;;  %v748_v1 = vld [vmem:[%s1000_s1 + $0x30] sm:$0xff]  ;;  %v747_v2 = vld [vmem:[%s1000_s1 + $0x28] sm:$0xff] }
   0x2   :  { %274 = vmatpush.bf16.msra.mxu0 %v749_v0  ;;  %750 = vmatpush.bf16.msra.mxu1 %v749_v0  ;;  %v746_v3 = vld [vmem:[%s1000_s1 + $0x20] sm:$0xff]  ;;  %v745_v4 = vld [vmem:[%s1000_s1 + $0x18] sm:$0xff]  ;;  %v744_v5 = vld [vmem:[%s1000_s1 + $0x10] sm:$0xff] }
   0x3   :  { %751 = vmatpush.bf16.msra.mxu2 %v749_v0  ;;  %752 = vmatpush.bf16.msra.mxu3 %v749_v0  ;;  %v743_v6 = vld [vmem:[%s1000_s1 + $0x8] sm:$0xff]  ;;  %v742_v7 = vld [vmem:[%s1000_s1] sm:$0xff]  ;;  %v728_v16 = vld [vmem:[%s1002_s0 + $0x10] sm:$0xff] }
   0x4   :  { %v726_v8 = vld [vmem:[%s1002_s0] sm:$0xff]  ;;  %v727_v12 = vld [vmem:[%s1002_s0 + $0x8] sm:$0xff]  ;;  %v732_v17 = vld [vmem:[%s1002_s0 + $0x30] sm:$0xff] }
   0x5   :  { %v730_v9 = vld [vmem:[%s1002_s0 + $0x20] sm:$0xff]  ;;  %v731_v13 = vld [vmem:[%s1002_s0 + $0x28] sm:$0xff]  ;;  %v736_v18 = vld [vmem:[%s1002_s0 + $0x50] sm:$0xff] }
   0x6   :  { %275 = vmatpush.bf16.msra.mxu0 %v748_v1  ;;  %753 = vmatpush.bf16.msra.mxu1 %v748_v1  ;;  %v734_v10 = vld [vmem:[%s1002_s0 + $0x40] sm:$0xff]  ;;  %v735_v14 = vld [vmem:[%s1002_s0 + $0x48] sm:$0xff]  ;;  %v740_v19 = vld [vmem:[%s1002_s0 + $0x70] sm:$0xff] }
   0x7   :  { %754 = vmatpush.bf16.msra.mxu2 %v748_v1  ;;  %755 = vmatpush.bf16.msra.mxu3 %v748_v1  ;;  %v738_v11 = vld [vmem:[%s1002_s0 + $0x60] sm:$0xff]  ;;  %v739_v15 = vld [vmem:[%s1002_s0 + $0x68] sm:$0xff]  ;;  %v729_v20 = vld [vmem:[%s1002_s0 + $0x18] sm:$0xff] }
   0x8   :  { %v733_v21 = vld [vmem:[%s1002_s0 + $0x38] sm:$0xff]  ;;  %v870_v24 = vld [vmem:[%s1001_s2] ss:$0 sm:$0xff] }
   0x9   :  { %v737_v22 = vld [vmem:[%s1002_s0 + $0x58] sm:$0xff] }
   0xa   :  { %276 = vmatpush.bf16.msra.mxu0 %v747_v2  ;;  %756 = vmatpush.bf16.msra.mxu1 %v747_v2  ;;  %v741_v23 = vld [vmem:[%s1002_s0 + $0x78] sm:$0xff] }
   0xb   :  { %757 = vmatpush.bf16.msra.mxu2 %v747_v2  ;;  %758 = vmatpush.bf16.msra.mxu3 %v747_v2 }
   0xe   :  { %277 = vmatpush.bf16.msra.mxu0 %v746_v3  ;;  %759 = vmatpush.bf16.msra.mxu1 %v746_v3 }
   0xf   :  { %760 = vmatpush.bf16.msra.mxu2 %v746_v3  ;;  %761 = vmatpush.bf16.msra.mxu3 %v746_v3 }
  0x12   :  { %278 = vmatpush.bf16.msra.mxu0 %v745_v4  ;;  %762 = vmatpush.bf16.msra.mxu1 %v745_v4 }
  0x13   :  { %763 = vmatpush.bf16.msra.mxu2 %v745_v4  ;;  %764 = vmatpush.bf16.msra.mxu3 %v745_v4 }
  0x16   :  { %279 = vmatpush.bf16.msra.mxu0 %v744_v5  ;;  %765 = vmatpush.bf16.msra.mxu1 %v744_v5 }
  0x17   :  { %766 = vmatpush.bf16.msra.mxu2 %v744_v5  ;;  %767 = vmatpush.bf16.msra.mxu3 %v744_v5 }
  0x1a   :  { %280 = vmatpush.bf16.msra.mxu0 %v743_v6  ;;  %768 = vmatpush.bf16.msra.mxu1 %v743_v6 }
  0x1b   :  { %769 = vmatpush.bf16.msra.mxu2 %v743_v6  ;;  %770 = vmatpush.bf16.msra.mxu3 %v743_v6 }
  0x1e   :  { %281 = vmatpush.bf16.msra.mxu0 %v742_v7  ;;  %771 = vmatpush.bf16.msra.mxu1 %v742_v7 }
  0x1f   :  { %772 = vmatpush.bf16.msra.mxu2 %v742_v7  ;;  %773 = vmatpush.bf16.msra.mxu3 %v742_v7 }
  0x21   :  { %282 = vmatmul.bf16.vlgmr.msra.gmra.mxu0 %v726_v8  ;;  %302 = vmatmul.bf16.vlgmr.msra.gmra.mxu1 %v730_v9 }
  0x22   :  { %322 = vmatmul.bf16.vlgmr.msra.gmra.mxu2 %v734_v10  ;;  %342 = vmatmul.bf16.vlgmr.msra.gmra.mxu3 %v738_v11 }
  0x31   :  { %287 = vmatmul.bf16.gmra.mxu0 %v727_v12  ;;  %307 = vmatmul.bf16.gmra.mxu1 %v731_v13 }
  0x32   :  { %327 = vmatmul.bf16.gmra.mxu2 %v735_v14  ;;  %347 = vmatmul.bf16.gmra.mxu3 %v739_v15 }
  0x41   :  { %292 = vmatmul.bf16.gmra.mxu0 %v728_v16  ;;  %312 = vmatmul.bf16.gmra.mxu1 %v732_v17 }
  0x42   :  { %332 = vmatmul.bf16.gmra.mxu2 %v736_v18  ;;  %352 = vmatmul.bf16.gmra.mxu3 %v740_v19 }
  0x51   :  { %297 = vmatmul.bf16.gmra.mxu0 %v729_v20  ;;  %317 = vmatmul.bf16.gmra.mxu1 %v733_v21 }
  0x52   :  { %337 = vmatmul.bf16.gmra.mxu2 %v737_v22  ;;  %357 = vmatmul.bf16.gmra.mxu3 %v741_v23 }
  0x9e   :  { %v283_v25 = vpop.f32.mrf.mxu0  ;;  %v303_v26 = vpop.f32.mrf.mxu1 }
  0x9f   :  { %v466_v27 = vadd.f32 %v870_v24, %v283_v25  ;;  %v474_v28 = vadd.f32 %v870_v24, %v303_v26 }
  0xa1   :  { %vm498_vm0 = vcmp.gt.f32.partialorder %v466_v27, 0.0  ;;  %v530_v29 = vmul.f32 0.2, %v466_v27  ;;  %vm506_vm1 = vcmp.gt.f32.partialorder %v474_v28, 0.0  ;;  %v538_v30 = vmul.f32 0.2, %v474_v28 }
  0xa3   :  { %v562_v31 = vsel %vm498_vm0, %v466_v27, %v530_v29  ;;  %v570_v32 = vsel %vm506_vm1, %v474_v28, %v538_v30 }
  0xa4   :  { %594 = vst [vmem:[%s1003_s3] sm:$0xff] %v562_v31 }
  0xa5   :  { %602 = vst [vmem:[%s1003_s3 + $0x40] sm:$0xff] %v570_v32  ;;  %v323_v33 = vpop.f32.mrf.mxu2  ;;  %v343_v34 = vpop.f32.mrf.mxu3 }
  0xa6   :  { %v482_v35 = vadd.f32 %v870_v24, %v323_v33  ;;  %v490_v36 = vadd.f32 %v870_v24, %v343_v34  ;;  %v285_v37 = vpop.f32.mrf.mxu0  ;;  %v305_v38 = vpop.f32.mrf.mxu1 }
  0xa7   :  { %v467_v39 = vadd.f32 %v870_v24, %v285_v37  ;;  %v475_v40 = vadd.f32 %v870_v24, %v305_v38 }
  0xa8   :  { %vm514_vm2 = vcmp.gt.f32.partialorder %v482_v35, 0.0  ;;  %v546_v41 = vmul.f32 0.2, %v482_v35  ;;  %vm522_vm3 = vcmp.gt.f32.partialorder %v490_v36, 0.0  ;;  %v554_v42 = vmul.f32 0.2, %v490_v36 }
  0xa9   :  { %vm499_vm4 = vcmp.gt.f32.partialorder %v467_v39, 0.0  ;;  %v531_v43 = vmul.f32 0.2, %v467_v39  ;;  %vm507_vm5 = vcmp.gt.f32.partialorder %v475_v40, 0.0  ;;  %v539_v44 = vmul.f32 0.2, %v475_v40 }
  0xaa   :  { %v578_v45 = vsel %vm514_vm2, %v482_v35, %v546_v41  ;;  %v586_v46 = vsel %vm522_vm3, %v490_v36, %v554_v42 }
  0xab   :  { %610 = vst [vmem:[%s1003_s3 + $0x80] sm:$0xff] %v578_v45  ;;  %v563_v47 = vsel %vm499_vm4, %v467_v39, %v531_v43  ;;  %v571_v48 = vsel %vm507_vm5, %v475_v40, %v539_v44 }
  0xac   :  { %618 = vst [vmem:[%s1003_s3 + $0xc0] sm:$0xff] %v586_v46 }
  0xad   :  { %595 = vst [vmem:[%s1003_s3 + $0x8] sm:$0xff] %v563_v47  ;;  %v325_v49 = vpop.f32.mrf.mxu2  ;;  %v345_v50 = vpop.f32.mrf.mxu3 }
  0xae   :  { %603 = vst [vmem:[%s1003_s3 + $0x48] sm:$0xff] %v571_v48  ;;  %v483_v51 = vadd.f32 %v870_v24, %v325_v49  ;;  %v491_v52 = vadd.f32 %v870_v24, %v345_v50  ;;  %v288_v53 = vpop.f32.mrf.mxu0  ;;  %v308_v54 = vpop.f32.mrf.mxu1 }
  0xaf   :  { %v468_v55 = vadd.f32 %v870_v24, %v288_v53  ;;  %v476_v56 = vadd.f32 %v870_v24, %v308_v54 }
  0xb0   :  { %vm515_vm6 = vcmp.gt.f32.partialorder %v483_v51, 0.0  ;;  %v547_v57 = vmul.f32 0.2, %v483_v51  ;;  %vm523_vm7 = vcmp.gt.f32.partialorder %v491_v52, 0.0  ;;  %v555_v58 = vmul.f32 0.2, %v491_v52 }
  0xb1   :  { %vm500_vm8 = vcmp.gt.f32.partialorder %v468_v55, 0.0  ;;  %v532_v59 = vmul.f32 0.2, %v468_v55  ;;  %vm508_vm9 = vcmp.gt.f32.partialorder %v476_v56, 0.0  ;;  %v540_v60 = vmul.f32 0.2, %v476_v56 }
  0xb2   :  { %v579_v61 = vsel %vm515_vm6, %v483_v51, %v547_v57  ;;  %v587_v62 = vsel %vm523_vm7, %v491_v52, %v555_v58 }
  0xb3   :  { %611 = vst [vmem:[%s1003_s3 + $0x88] sm:$0xff] %v579_v61  ;;  %v564_v63 = vsel %vm500_vm8, %v468_v55, %v532_v59  ;;  %v572_v0 = vsel %vm508_vm9, %v476_v56, %v540_v60 }
  0xb4   :  { %619 = vst [vmem:[%s1003_s3 + $0xc8] sm:$0xff] %v587_v62 }
  0xb5   :  { %596 = vst [vmem:[%s1003_s3 + $0x10] sm:$0xff] %v564_v63  ;;  %v328_v1 = vpop.f32.mrf.mxu2  ;;  %v348_v2 = vpop.f32.mrf.mxu3 }
  0xb6   :  { %604 = vst [vmem:[%s1003_s3 + $0x50] sm:$0xff] %v572_v0  ;;  %v484_v3 = vadd.f32 %v870_v24, %v328_v1  ;;  %v492_v4 = vadd.f32 %v870_v24, %v348_v2  ;;  %v290_v5 = vpop.f32.mrf.mxu0  ;;  %v310_v6 = vpop.f32.mrf.mxu1 }
  0xb7   :  { %v469_v7 = vadd.f32 %v870_v24, %v290_v5  ;;  %v477_v8 = vadd.f32 %v870_v24, %v310_v6 }
  0xb8   :  { %vm516_vm10 = vcmp.gt.f32.partialorder %v484_v3, 0.0  ;;  %v548_v9 = vmul.f32 0.2, %v484_v3  ;;  %vm524_vm11 = vcmp.gt.f32.partialorder %v492_v4, 0.0  ;;  %v556_v10 = vmul.f32 0.2, %v492_v4 }
  0xb9   :  { %vm501_vm12 = vcmp.gt.f32.partialorder %v469_v7, 0.0  ;;  %v533_v11 = vmul.f32 0.2, %v469_v7  ;;  %vm509_vm13 = vcmp.gt.f32.partialorder %v477_v8, 0.0  ;;  %v541_v12 = vmul.f32 0.2, %v477_v8 }
  0xba   :  { %v580_v13 = vsel %vm516_vm10, %v484_v3, %v548_v9  ;;  %v588_v14 = vsel %vm524_vm11, %v492_v4, %v556_v10 }
  0xbb   :  { %612 = vst [vmem:[%s1003_s3 + $0x90] sm:$0xff] %v580_v13  ;;  %v565_v15 = vsel %vm501_vm12, %v469_v7, %v533_v11  ;;  %v573_v16 = vsel %vm509_vm13, %v477_v8, %v541_v12 }
  0xbc   :  { %620 = vst [vmem:[%s1003_s3 + $0xd0] sm:$0xff] %v588_v14 }
  0xbd   :  { %597 = vst [vmem:[%s1003_s3 + $0x18] sm:$0xff] %v565_v15  ;;  %v330_v17 = vpop.f32.mrf.mxu2  ;;  %v350_v18 = vpop.f32.mrf.mxu3 }
  0xbe   :  { %605 = vst [vmem:[%s1003_s3 + $0x58] sm:$0xff] %v573_v16  ;;  %v485_v19 = vadd.f32 %v870_v24, %v330_v17  ;;  %v493_v20 = vadd.f32 %v870_v24, %v350_v18  ;;  %v293_v21 = vpop.f32.mrf.mxu0  ;;  %v313_v22 = vpop.f32.mrf.mxu1 }
  0xbf   :  { %v470_v23 = vadd.f32 %v870_v24, %v293_v21  ;;  %v478_v25 = vadd.f32 %v870_v24, %v313_v22 }
  0xc0   :  { %vm517_vm14 = vcmp.gt.f32.partialorder %v485_v19, 0.0  ;;  %v549_v26 = vmul.f32 0.2, %v485_v19  ;;  %vm525_vm15 = vcmp.gt.f32.partialorder %v493_v20, 0.0  ;;  %v557_v27 = vmul.f32 0.2, %v493_v20 }
  0xc1   :  { %vm502_vm0 = vcmp.gt.f32.partialorder %v470_v23, 0.0  ;;  %v534_v28 = vmul.f32 0.2, %v470_v23  ;;  %vm510_vm1 = vcmp.gt.f32.partialorder %v478_v25, 0.0  ;;  %v542_v29 = vmul.f32 0.2, %v478_v25 }
  0xc2   :  { %v581_v30 = vsel %vm517_vm14, %v485_v19, %v549_v26  ;;  %v589_v31 = vsel %vm525_vm15, %v493_v20, %v557_v27 }
  0xc3   :  { %613 = vst [vmem:[%s1003_s3 + $0x98] sm:$0xff] %v581_v30  ;;  %v566_v32 = vsel %vm502_vm0, %v470_v23, %v534_v28  ;;  %v574_v33 = vsel %vm510_vm1, %v478_v25, %v542_v29 }
  0xc4   :  { %621 = vst [vmem:[%s1003_s3 + $0xd8] sm:$0xff] %v589_v31 }
  0xc5   :  { %598 = vst [vmem:[%s1003_s3 + $0x20] sm:$0xff] %v566_v32  ;;  %v333_v34 = vpop.f32.mrf.mxu2  ;;  %v353_v35 = vpop.f32.mrf.mxu3 }
  0xc6   :  { %606 = vst [vmem:[%s1003_s3 + $0x60] sm:$0xff] %v574_v33  ;;  %v486_v36 = vadd.f32 %v870_v24, %v333_v34  ;;  %v494_v37 = vadd.f32 %v870_v24, %v353_v35  ;;  %v295_v38 = vpop.f32.mrf.mxu0  ;;  %v315_v39 = vpop.f32.mrf.mxu1 }
  0xc7   :  { %v471_v40 = vadd.f32 %v870_v24, %v295_v38  ;;  %v479_v41 = vadd.f32 %v870_v24, %v315_v39 }
  0xc8   :  { %vm518_vm2 = vcmp.gt.f32.partialorder %v486_v36, 0.0  ;;  %v550_v42 = vmul.f32 0.2, %v486_v36  ;;  %vm526_vm3 = vcmp.gt.f32.partialorder %v494_v37, 0.0  ;;  %v558_v43 = vmul.f32 0.2, %v494_v37 }
  0xc9   :  { %vm503_vm4 = vcmp.gt.f32.partialorder %v471_v40, 0.0  ;;  %v535_v44 = vmul.f32 0.2, %v471_v40  ;;  %vm511_vm5 = vcmp.gt.f32.partialorder %v479_v41, 0.0  ;;  %v543_v45 = vmul.f32 0.2, %v479_v41 }
  0xca   :  { %v582_v46 = vsel %vm518_vm2, %v486_v36, %v550_v42  ;;  %v590_v47 = vsel %vm526_vm3, %v494_v37, %v558_v43 }
  0xcb   :  { %614 = vst [vmem:[%s1003_s3 + $0xa0] sm:$0xff] %v582_v46  ;;  %v567_v48 = vsel %vm503_vm4, %v471_v40, %v535_v44  ;;  %v575_v49 = vsel %vm511_vm5, %v479_v41, %v543_v45 }
  0xcc   :  { %622 = vst [vmem:[%s1003_s3 + $0xe0] sm:$0xff] %v590_v47 }
  0xcd   :  { %599 = vst [vmem:[%s1003_s3 + $0x28] sm:$0xff] %v567_v48  ;;  %v335_v50 = vpop.f32.mrf.mxu2  ;;  %v355_v51 = vpop.f32.mrf.mxu3 }
  0xce   :  { %607 = vst [vmem:[%s1003_s3 + $0x68] sm:$0xff] %v575_v49  ;;  %v487_v52 = vadd.f32 %v870_v24, %v335_v50  ;;  %v495_v53 = vadd.f32 %v870_v24, %v355_v51  ;;  %v298_v54 = vpop.f32.mrf.mxu0  ;;  %v318_v55 = vpop.f32.mrf.mxu1 }
  0xcf   :  { %v472_v56 = vadd.f32 %v870_v24, %v298_v54  ;;  %v480_v57 = vadd.f32 %v870_v24, %v318_v55 }
  0xd0   :  { %vm519_vm6 = vcmp.gt.f32.partialorder %v487_v52, 0.0  ;;  %v551_v58 = vmul.f32 0.2, %v487_v52  ;;  %vm527_vm7 = vcmp.gt.f32.partialorder %v495_v53, 0.0  ;;  %v559_v59 = vmul.f32 0.2, %v495_v53 }
  0xd1   :  { %vm504_vm8 = vcmp.gt.f32.partialorder %v472_v56, 0.0  ;;  %v536_v60 = vmul.f32 0.2, %v472_v56  ;;  %vm512_vm9 = vcmp.gt.f32.partialorder %v480_v57, 0.0  ;;  %v544_v61 = vmul.f32 0.2, %v480_v57 }
  0xd2   :  { %v583_v62 = vsel %vm519_vm6, %v487_v52, %v551_v58  ;;  %v591_v63 = vsel %vm527_vm7, %v495_v53, %v559_v59 }
  0xd3   :  { %615 = vst [vmem:[%s1003_s3 + $0xa8] sm:$0xff] %v583_v62  ;;  %v568_v0 = vsel %vm504_vm8, %v472_v56, %v536_v60  ;;  %v576_v1 = vsel %vm512_vm9, %v480_v57, %v544_v61 }
  0xd4   :  { %623 = vst [vmem:[%s1003_s3 + $0xe8] sm:$0xff] %v591_v63 }
  0xd5   :  { %600 = vst [vmem:[%s1003_s3 + $0x30] sm:$0xff] %v568_v0  ;;  %v338_v2 = vpop.f32.mrf.mxu2  ;;  %v358_v3 = vpop.f32.mrf.mxu3 }
  0xd6   :  { %608 = vst [vmem:[%s1003_s3 + $0x70] sm:$0xff] %v576_v1  ;;  %v488_v4 = vadd.f32 %v870_v24, %v338_v2  ;;  %v496_v5 = vadd.f32 %v870_v24, %v358_v3  ;;  %v300_v6 = vpop.f32.mrf.mxu0  ;;  %v320_v7 = vpop.f32.mrf.mxu1 }
  0xd7   :  { %v473_v8 = vadd.f32 %v870_v24, %v300_v6  ;;  %v481_v9 = vadd.f32 %v870_v24, %v320_v7 }
  0xd8   :  { %vm520_vm10 = vcmp.gt.f32.partialorder %v488_v4, 0.0  ;;  %v552_v10 = vmul.f32 0.2, %v488_v4  ;;  %vm528_vm11 = vcmp.gt.f32.partialorder %v496_v5, 0.0  ;;  %v560_v11 = vmul.f32 0.2, %v496_v5 }
  0xd9   :  { %vm505_vm12 = vcmp.gt.f32.partialorder %v473_v8, 0.0  ;;  %v537_v12 = vmul.f32 0.2, %v473_v8  ;;  %vm513_vm13 = vcmp.gt.f32.partialorder %v481_v9, 0.0  ;;  %v545_v13 = vmul.f32 0.2, %v481_v9 }
  0xda   :  { %v584_v14 = vsel %vm520_vm10, %v488_v4, %v552_v10  ;;  %v592_v15 = vsel %vm528_vm11, %v496_v5, %v560_v11 }
  0xdb   :  { %616 = vst [vmem:[%s1003_s3 + $0xb0] sm:$0xff] %v584_v14  ;;  %v569_v16 = vsel %vm505_vm12, %v473_v8, %v537_v12  ;;  %v577_v17 = vsel %vm513_vm13, %v481_v9, %v545_v13 }
  0xdc   :  { %624 = vst [vmem:[%s1003_s3 + $0xf0] sm:$0xff] %v592_v15 }
  0xdd   :  { %601 = vst [vmem:[%s1003_s3 + $0x38] sm:$0xff] %v569_v16  ;;  %v340_v18 = vpop.f32.mrf.mxu2  ;;  %v360_v19 = vpop.f32.mrf.mxu3 }
  0xde   :  { %609 = vst [vmem:[%s1003_s3 + $0x78] sm:$0xff] %v577_v17  ;;  %v489_v20 = vadd.f32 %v870_v24, %v340_v18  ;;  %v497_v21 = vadd.f32 %v870_v24, %v360_v19 }
  0xe0   :  { %vm521_vm14 = vcmp.gt.f32.partialorder %v489_v20, 0.0  ;;  %v553_v22 = vmul.f32 0.2, %v489_v20  ;;  %vm529_vm15 = vcmp.gt.f32.partialorder %v497_v21, 0.0  ;;  %v561_v23 = vmul.f32 0.2, %v497_v21 }
  0xe2   :  { %v585_v25 = vsel %vm521_vm14, %v489_v20, %v553_v22  ;;  %v593_v26 = vsel %vm529_vm15, %v497_v21, %v561_v23 }
  0xe3   :  { %617 = vst [vmem:[%s1003_s3 + $0xb8] sm:$0xff] %v585_v25 }
  0xe4   :  { %625 = vst [vmem:[%s1003_s3 + $0xf8] sm:$0xff] %v593_v26 }

// kernel: _lambda_.9
= control target key start
LH: loop header
LB: loop body
LE: loop exit
PB: predicated region body
PF: predicated region fallthrough
CT: control target
= control target key end

     0   :  { %s593_s1 = inlined_call_operand.vmem [shape: bf16[256,128], index: 1, kind: input, shape index: {}]   ;;  %s594_s0 = inlined_call_operand.vmem [shape: bf16[56,256], index: 0, kind: input, shape index: {}]   ;;  %s595_s2 = inlined_call_operand.vmem [shape: f32[56,128], index: 2, kind: output, shape index: {0}]   ;;  %s596_s3 = inlined_call_operand.vmem [shape: f32[8,128], index: 3, kind: output, shape index: {1}]  }
   0x1   :  { %v437_v0 = vld [vmem:[%s593_s1 + $0x38] sm:$0xff]  ;;  %v436_v2 = vld [vmem:[%s593_s1 + $0x30] sm:$0xff]  ;;  %v435_v4 = vld [vmem:[%s593_s1 + $0x28] sm:$0xff] }
   0x2   :  { %v445_v1 = vld [vmem:[%s593_s1 + $0x78] sm:$0xff]  ;;  %203 = vmatpush.bf16.msra.mxu0 %v437_v0  ;;  %446 = vmatpush.bf16.msra.mxu2 %v437_v0  ;;  %v444_v3 = vld [vmem:[%s593_s1 + $0x70] sm:$0xff]  ;;  %v443_v5 = vld [vmem:[%s593_s1 + $0x68] sm:$0xff] }
   0x3   :  { %231 = vmatpush.bf16.msra.mxu1 %v445_v1  ;;  %454 = vmatpush.bf16.msra.mxu3 %v445_v1  ;;  %v434_v6 = vld [vmem:[%s593_s1 + $0x20] sm:$0xff]  ;;  %v433_v8 = vld [vmem:[%s593_s1 + $0x18] sm:$0xff]  ;;  %v432_v10 = vld [vmem:[%s593_s1 + $0x10] sm:$0xff] }
   0x4   :  { %v442_v7 = vld [vmem:[%s593_s1 + $0x60] sm:$0xff]  ;;  %v441_v9 = vld [vmem:[%s593_s1 + $0x58] sm:$0xff]  ;;  %v440_v11 = vld [vmem:[%s593_s1 + $0x50] sm:$0xff] }
   0x5   :  { %v431_v12 = vld [vmem:[%s593_s1 + $0x8] sm:$0xff]  ;;  %v430_v14 = vld [vmem:[%s593_s1] sm:$0xff]  ;;  %v37_v28 = vld [vmem:[%s594_s0 + $0x30] sm:$0xff] }
   0x6   :  { %204 = vmatpush.bf16.msra.mxu0 %v436_v2  ;;  %447 = vmatpush.bf16.msra.mxu2 %v436_v2  ;;  %v439_v13 = vld [vmem:[%s593_s1 + $0x48] sm:$0xff]  ;;  %v438_v15 = vld [vmem:[%s593_s1 + $0x40] sm:$0xff]  ;;  %v89_v29 = vunpack.c.l.b16 %v37_v28  ;;  %v346_v30 = vld [vmem:[%s594_s0 + $0x10] sm:$0xf]  ;;  %v90_v32 = vunpack.c.h.b16 %v37_v28 }
   0x7   :  { %232 = vmatpush.bf16.msra.mxu1 %v444_v3  ;;  %455 = vmatpush.bf16.msra.mxu3 %v444_v3  ;;  %v338_v16 = vld [vmem:[%s594_s0] sm:$0xf]  ;;  %v425_v17 = vld [vmem:[%s594_s0 + $0x4] sm:$0xf0]  ;;  %v424_v20 = vld [vmem:[%s594_s0 + $0x4] sm:$0xf] }
   0x8   :  { %v354_v18 = vld [vmem:[%s594_s0 + $0x20] sm:$0xf]  ;;  %v429_v19 = vld [vmem:[%s594_s0 + $0x24] sm:$0xf0]  ;;  %v340_v21 = vld [vmem:[%s594_s0 + $0x8] sm:$0xf0]  ;;  %v339_v24 = vor.u32 %v425_v17, %v338_v16  ;;  %v97_v36 = vpack.c.b16 %v89_v29, %v89_v29  ;;  %v98_v38 = vpack.c.b16 %v90_v32, %v90_v32 }
   0x9   :  { %v428_v22 = vld [vmem:[%s594_s0 + $0x24] sm:$0xf]  ;;  %v356_v23 = vld [vmem:[%s594_s0 + $0x28] sm:$0xf0]  ;;  %v355_v25 = vor.u32 %v429_v19, %v354_v18  ;;  %v343_v26 = vor.u32 %v424_v20, %v340_v21  ;;  %v427_v31 = vld [vmem:[%s594_s0 + $0x14] sm:$0xf0]  ;;  %v314_v20 = vlaneseq }
   0xa   :  { %205 = vmatpush.bf16.msra.mxu0 %v435_v4  ;;  %448 = vmatpush.bf16.msra.mxu2 %v435_v4  ;;  %v359_v27 = vor.u32 %v428_v22, %v356_v23  ;;  %v426_v33 = vld [vmem:[%s594_s0 + $0x14] sm:$0xf]  ;;  %v348_v34 = vld [vmem:[%s594_s0 + $0x18] sm:$0xf0]  ;;  %v347_v35 = vor.u32 %v427_v31, %v346_v30 }
   0xb   :  { %233 = vmatpush.bf16.msra.mxu1 %v443_v5  ;;  %456 = vmatpush.bf16.msra.mxu3 %v443_v5  ;;  %v351_v37 = vor.u32 %v426_v33, %v348_v34 }
   0xe   :  { %206 = vmatpush.bf16.msra.mxu0 %v434_v6  ;;  %449 = vmatpush.bf16.msra.mxu2 %v434_v6 }
   0xf   :  { %234 = vmatpush.bf16.msra.mxu1 %v442_v7  ;;  %457 = vmatpush.bf16.msra.mxu3 %v442_v7 }
  0x12   :  { %207 = vmatpush.bf16.msra.mxu0 %v433_v8  ;;  %450 = vmatpush.bf16.msra.mxu2 %v433_v8 }
  0x13   :  { %235 = vmatpush.bf16.msra.mxu1 %v441_v9  ;;  %458 = vmatpush.bf16.msra.mxu3 %v441_v9 }
  0x16   :  { %208 = vmatpush.bf16.msra.mxu0 %v432_v10  ;;  %451 = vmatpush.bf16.msra.mxu2 %v432_v10 }
  0x17   :  { %236 = vmatpush.bf16.msra.mxu1 %v440_v11  ;;  %459 = vmatpush.bf16.msra.mxu3 %v440_v11 }
  0x1a   :  { %209 = vmatpush.bf16.msra.mxu0 %v431_v12  ;;  %452 = vmatpush.bf16.msra.mxu2 %v431_v12 }
  0x1b   :  { %237 = vmatpush.bf16.msra.mxu1 %v439_v13  ;;  %460 = vmatpush.bf16.msra.mxu3 %v439_v13 }
  0x1e   :  { %210 = vmatpush.bf16.msra.mxu0 %v430_v14  ;;  %453 = vmatpush.bf16.msra.mxu2 %v430_v14 }
  0x1f   :  { %238 = vmatpush.bf16.msra.mxu1 %v438_v15  ;;  %461 = vmatpush.bf16.msra.mxu3 %v438_v15 }
  0x21   :  { %211 = vmatmul.bf16.vlgmr.msra.gmra.mxu0 %v339_v24  ;;  %221 = vmatmul.bf16.vlgmr.msra.gmra.mxu2 %v355_v25  ;;  %v315_v25 = vshrl.u32 %v314_v20, 7 }
  0x22   :  { %239 = vmatmul.bf16.vlgmr.msra.gmra.mxu1 %v343_v26  ;;  %249 = vmatmul.bf16.vlgmr.msra.gmra.mxu3 %v359_v27 }
  0x23   :  { %vm317_vm0 = vcmp.eq.s32.totalorder %v315_v25, 1  ;;  %vm316_vm1 = vcmp.eq.s32.totalorder %v315_v25, 0 }
  0x31   :  { %216 = vmatmul.bf16.gmra.mxu0 %v347_v35  ;;  %226 = vmatmul.bf16.gmra.mxu2 %v97_v36 }
  0x32   :  { %244 = vmatmul.bf16.gmra.mxu1 %v351_v37  ;;  %254 = vmatmul.bf16.gmra.mxu3 %v98_v38 }
  0x9e   :  { %v212_v39 = vpop.f32.mrf.mxu0 }
  0x9f   :  { %v240_v40 = vpop.f32.mrf.mxu1 }
  0xa0   :  { %v241_v41 = vadd.f32 %v240_v40, %v212_v39 }
  0xa2   :  { %321 = vst [vmem:[%s595_s2] sm:$0xff] %v241_v41  ;;  %v295_v57 = vmul.f32 %v241_v41, %v241_v41 }
  0xa4   :  { %v222_v42 = vpop.f32.mrf.mxu2 }
  0xa5   :  { %v250_v43 = vpop.f32.mrf.mxu3 }
  0xa6   :  { %v251_v44 = vadd.f32 %v250_v43, %v222_v42  ;;  %v214_v45 = vpop.f32.mrf.mxu0 }
  0xa7   :  { %v242_v46 = vpop.f32.mrf.mxu1 }
  0xa8   :  { %325 = vst [vmem:[%s595_s2 + $0x20] sm:$0xff] %v251_v44  ;;  %v243_v47 = vadd.f32 %v242_v46, %v214_v45  ;;  %v299_v5 = vmul.f32 %v251_v44, %v251_v44 }
  0xaa   :  { %322 = vst [vmem:[%s595_s2 + $0x8] sm:$0xff] %v243_v47  ;;  %v296_v54 = vmul.f32 %v243_v47, %v243_v47  ;;  %v283_v58 = vadd.f32 %v243_v47, %v241_v41 }
  0xac   :  { %v224_v48 = vpop.f32.mrf.mxu2  ;;  %v302_v63 = vadd.f32 %v296_v54, %v295_v57 }
  0xad   :  { %v252_v49 = vpop.f32.mrf.mxu3 }
  0xae   :  { %v253_v50 = vadd.f32 %v252_v49, %v224_v48  ;;  %v217_v51 = vpop.f32.mrf.mxu0 }
  0xaf   :  { %v245_v52 = vpop.f32.mrf.mxu1 }
  0xb0   :  { %326 = vst [vmem:[%s595_s2 + $0x28] sm:$0xff] %v253_v50  ;;  %v246_v53 = vadd.f32 %v245_v52, %v217_v51  ;;  %v300_v10 = vmul.f32 %v253_v50, %v253_v50 }
  0xb2   :  { %323 = vst [vmem:[%s595_s2 + $0x10] sm:$0xff] %v246_v53  ;;  %v297_v59 = vmul.f32 %v246_v53, %v246_v53  ;;  %v284_v0 = vadd.f32 %v283_v58, %v246_v53 }
  0xb4   :  { %v227_v55 = vpop.f32.mrf.mxu2  ;;  %v303_v2 = vadd.f32 %v302_v63, %v297_v59 }
  0xb5   :  { %v255_v56 = vpop.f32.mrf.mxu3 }
  0xb6   :  { %v256_v60 = vadd.f32 %v255_v56, %v227_v55  ;;  %v219_v61 = vpop.f32.mrf.mxu0 }
  0xb7   :  { %v247_v62 = vpop.f32.mrf.mxu1 }
  0xb8   :  { %327 = vst [vmem:[%s595_s2 + $0x30] sm:$0xff] %v256_v60  ;;  %v248_v1 = vadd.f32 %v247_v62, %v219_v61  ;;  %v301_v11 = vmul.f32 %v256_v60, %v256_v60 }
  0xba   :  { %v285_v3 = vadd.f32 %v284_v0, %v248_v1  ;;  %v298_v4 = vmul.f32 %v248_v1, %v248_v1  ;;  %324 = vst [vmem:[%s595_s2 + $0x18] sm:$0xff] %v248_v1 }
  0xbc   :  { %v286_v6 = vadd.f32 %v285_v3, %v251_v44  ;;  %v304_v7 = vadd.f32 %v303_v2, %v298_v4  ;;  %v229_v8 = vpop.f32.mrf.mxu2 }
  0xbd   :  { %v257_v9 = vpop.f32.mrf.mxu3 }
  0xbe   :  { %v287_v12 = vadd.f32 %v286_v6, %v253_v50  ;;  %v305_v13 = vadd.f32 %v304_v7, %v299_v5 }
  0xc0   :  { %v288_v14 = vadd.f32 %v287_v12, %v256_v60  ;;  %v306_v15 = vadd.f32 %v305_v13, %v300_v10 }
  0xc2   :  { %v289_v16 = vrot.slane %v288_v14, 4  ;;  %v307_v17 = vadd.f32 %v306_v15, %v301_v11 }
  0xc4   :  { %v290_v18 = vadd.f32 %v289_v16, %v288_v14  ;;  %v308_v19 = vrot.slane %v307_v17, 4 }
  0xc6   :  { %v291_v21 = vrot.slane %v290_v18, 2  ;;  %v309_v22 = vadd.f32 %v308_v19, %v307_v17 }
  0xc8   :  { %v292_v23 = vadd.f32 %v291_v21, %v290_v18  ;;  %v310_v24 = vrot.slane %v309_v22, 2 }
  0xca   :  { %v311_v26 = vadd.f32 %v310_v24, %v309_v22  ;;  %v293_v27 = vrot.slane %v292_v23, 1 }
  0xcc   :  { %v312_v28 = vrot.slane %v311_v26, 1  ;;  %v294_v30 = vadd.f32 %v293_v27, %v292_v23 }
  0xce   :  { %v313_v29 = vadd.f32 %v312_v28, %v311_v26 }
  0xd0   :  { %v318_v31 = vsel %vm317_vm0, %v313_v29, 0.0 }
  0xd1   :  { %v319_v32 = vsel %vm316_vm1, %v294_v30, %v318_v31 }
  0xd2   :  { %320 = vst [vmem:[%s596_s3] sm:$0xff] %v319_v32 }

// kernel: _lambda_.10
= control target key start
LH: loop header
LB: loop body
LE: loop exit
PB: predicated region body
PF: predicated region fallthrough
CT: control target
= control target key end

     0   :  { %s145_s0 = inlined_call_operand.vmem [shape: f32[56,128], index: 0, kind: input, shape index: {}]   ;;  %s146_s1 = inlined_call_operand.vmem [shape: f32[1,128], index: 1, kind: input, shape index: {}]   ;;  %s147_s2 = inlined_call_operand.vmem [shape: f32[1,128], index: 2, kind: input, shape index: {}]   ;;  %s148_s3 = inlined_call_operand.vmem [shape: f32[56,128], index: 3, kind: output, shape index: {}]  }
   0x1   :  { %v14_v0 = vld [vmem:[%s145_s0] sm:$0xff]  ;;  %v15_v3 = vld [vmem:[%s145_s0 + $0x8] sm:$0xff]  ;;  %v16_v6 = vld [vmem:[%s145_s0 + $0x10] sm:$0xff] }
   0x2   :  { %v75_v1 = vld [vmem:[%s146_s1] ss:$0 sm:$0xff]  ;;  %v17_v7 = vld [vmem:[%s145_s0 + $0x18] sm:$0xff]  ;;  %v19_v12 = vld [vmem:[%s145_s0 + $0x28] sm:$0xff] }
   0x3   :  { %v76_v2 = vld [vmem:[%s147_s2] ss:$0 sm:$0xff]  ;;  %v25_v4 = vmul.f32 %v75_v1, %v14_v0  ;;  %v26_v5 = vmul.f32 %v75_v1, %v15_v3  ;;  %v27_v9 = vmul.f32 %v75_v1, %v16_v6  ;;  %v28_v10 = vmul.f32 %v75_v1, %v17_v7  ;;  %v20_v13 = vld [vmem:[%s145_s0 + $0x30] sm:$0xff] }
   0x4   :  { %v18_v8 = vld [vmem:[%s145_s0 + $0x20] sm:$0xff]  ;;  %v30_v16 = vmul.f32 %v75_v1, %v19_v12  ;;  %v31_v20 = vmul.f32 %v75_v1, %v20_v13 }
   0x5   :  { %v29_v11 = vmul.f32 %v75_v1, %v18_v8  ;;  %v36_v14 = vadd.f32 %v76_v2, %v25_v4  ;;  %v37_v15 = vadd.f32 %v76_v2, %v26_v5  ;;  %v38_v17 = vadd.f32 %v76_v2, %v27_v9 }
   0x6   :  { %v39_v18 = vadd.f32 %v76_v2, %v28_v10  ;;  %v41_v30 = vadd.f32 %v76_v2, %v30_v16  ;;  %v42_v31 = vadd.f32 %v76_v2, %v31_v20 }
   0x7   :  { %v40_v19 = vadd.f32 %v76_v2, %v29_v11  ;;  %vm43_vm0 = vcmp.gt.f32.partialorder %v36_v14, 0.0  ;;  %v50_v21 = vmul.f32 0.2, %v36_v14  ;;  %vm44_vm1 = vcmp.gt.f32.partialorder %v37_v15, 0.0 }
   0x8   :  { %v51_v22 = vmul.f32 0.2, %v37_v15  ;;  %vm45_vm2 = vcmp.gt.f32.partialorder %v38_v17, 0.0  ;;  %v52_v23 = vmul.f32 0.2, %v38_v17  ;;  %vm46_vm3 = vcmp.gt.f32.partialorder %v39_v18, 0.0 }
   0x9   :  { %v53_v24 = vmul.f32 0.2, %v39_v18  ;;  %v57_v25 = vsel %vm43_vm0, %v36_v14, %v50_v21  ;;  %vm47_vm4 = vcmp.gt.f32.partialorder %v40_v19, 0.0  ;;  %v54_v27 = vmul.f32 0.2, %v40_v19 }
   0xa   :  { %v58_v26 = vsel %vm44_vm1, %v37_v15, %v51_v22  ;;  %64 = vst [vmem:[%s148_s3] sm:$0xff] %v57_v25  ;;  %v59_v28 = vsel %vm45_vm2, %v38_v17, %v52_v23  ;;  %vm48_vm5 = vcmp.gt.f32.partialorder %v41_v30, 0.0  ;;  %v55_v33 = vmul.f32 0.2, %v41_v30 }
   0xb   :  { %v60_v29 = vsel %vm46_vm3, %v39_v18, %v53_v24  ;;  %65 = vst [vmem:[%s148_s3 + $0x8] sm:$0xff] %v58_v26  ;;  %v61_v32 = vsel %vm47_vm4, %v40_v19, %v54_v27  ;;  %vm49_vm6 = vcmp.gt.f32.partialorder %v42_v31, 0.0  ;;  %v56_v34 = vmul.f32 0.2, %v42_v31 }
   0xc   :  { %66 = vst [vmem:[%s148_s3 + $0x10] sm:$0xff] %v59_v28  ;;  %v62_v35 = vsel %vm48_vm5, %v41_v30, %v55_v33 }
   0xd   :  { %67 = vst [vmem:[%s148_s3 + $0x18] sm:$0xff] %v60_v29  ;;  %v63_v36 = vsel %vm49_vm6, %v42_v31, %v56_v34 }
   0xe   :  { %68 = vst [vmem:[%s148_s3 + $0x20] sm:$0xff] %v61_v32 }
   0xf   :  { %69 = vst [vmem:[%s148_s3 + $0x28] sm:$0xff] %v62_v35 }
  0x10   :  { %70 = vst [vmem:[%s148_s3 + $0x30] sm:$0xff] %v63_v36 }

// kernel: _lambda_.12
= control target key start
LH: loop header
LB: loop body
LE: loop exit
PB: predicated region body
PF: predicated region fallthrough
CT: control target
= control target key end

     0   :  { %s80_s0 = inlined_call_operand.vmem [shape: f32[16,128], index: 0, kind: input, shape index: {}]   ;;  %s81_s1 = inlined_call_operand.vmem [shape: f32[1,128], index: 1, kind: input, shape index: {}]   ;;  %s82_s2 = inlined_call_operand.vmem [shape: f32[1,128], index: 2, kind: input, shape index: {}]   ;;  %s83_s3 = inlined_call_operand.vmem [shape: f32[16,128], index: 3, kind: output, shape index: {}]  }
   0x1   :  { %v14_v0 = vld [vmem:[%s80_s0] sm:$0xff]  ;;  %v15_v3 = vld [vmem:[%s80_s0 + $0x8] sm:$0xff] }
   0x2   :  { %v40_v1 = vld [vmem:[%s81_s1] ss:$0 sm:$0xff] }
   0x3   :  { %v41_v2 = vld [vmem:[%s82_s2] ss:$0 sm:$0xff]  ;;  %v20_v4 = vmul.f32 %v40_v1, %v14_v0  ;;  %v21_v5 = vmul.f32 %v40_v1, %v15_v3 }
   0x5   :  { %v26_v6 = vadd.f32 %v41_v2, %v20_v4  ;;  %v27_v7 = vadd.f32 %v41_v2, %v21_v5 }
   0x7   :  { %vm28_vm0 = vcmp.gt.f32.partialorder %v26_v6, 0.0  ;;  %v30_v8 = vmul.f32 0.2, %v26_v6  ;;  %vm29_vm1 = vcmp.gt.f32.partialorder %v27_v7, 0.0  ;;  %v31_v9 = vmul.f32 0.2, %v27_v7 }
   0x9   :  { %v32_v10 = vsel %vm28_vm0, %v26_v6, %v30_v8  ;;  %v33_v11 = vsel %vm29_vm1, %v27_v7, %v31_v9 }
   0xa   :  { %34 = vst [vmem:[%s83_s3] sm:$0xff] %v32_v10 }
   0xb   :  { %35 = vst [vmem:[%s83_s3 + $0x8] sm:$0xff] %v33_v11 }

// kernel: _lambda_.11
= control target key start
LH: loop header
LB: loop body
LE: loop exit
PB: predicated region body
PF: predicated region fallthrough
CT: control target
= control target key end

     0   :  { %s728_s1 = inlined_call_operand.vmem [shape: bf16[512,128], index: 1, kind: input, shape index: {}]   ;;  %s729_s0 = inlined_call_operand.vmem [shape: bf16[16,512], index: 0, kind: input, shape index: {}]   ;;  %s730_s2 = inlined_call_operand.vmem [shape: f32[16,128], index: 2, kind: output, shape index: {0}]   ;;  %s731_s3 = inlined_call_operand.vmem [shape: f32[8,128], index: 3, kind: output, shape index: {1}]  }
   0x1   :  { %v554_v0 = vld [vmem:[%s728_s1 + $0x38] sm:$0xff]  ;;  %v553_v4 = vld [vmem:[%s728_s1 + $0x30] sm:$0xff]  ;;  %v552_v8 = vld [vmem:[%s728_s1 + $0x28] sm:$0xff] }
   0x2   :  { %v562_v1 = vld [vmem:[%s728_s1 + $0x78] sm:$0xff]  ;;  %301 = vmatpush.bf16.msra.mxu0 %v554_v0  ;;  %v561_v5 = vld [vmem:[%s728_s1 + $0x70] sm:$0xff]  ;;  %v560_v9 = vld [vmem:[%s728_s1 + $0x68] sm:$0xff] }
   0x3   :  { %v570_v2 = vld [vmem:[%s728_s1 + $0xb8] sm:$0xff]  ;;  %315 = vmatpush.bf16.msra.mxu1 %v562_v1  ;;  %v569_v6 = vld [vmem:[%s728_s1 + $0xb0] sm:$0xff]  ;;  %v568_v10 = vld [vmem:[%s728_s1 + $0xa8] sm:$0xff]  ;;  %v382_v1 = vlaneseq }
   0x4   :  { %v578_v3 = vld [vmem:[%s728_s1 + $0xf8] sm:$0xff]  ;;  %329 = vmatpush.bf16.msra.mxu2 %v570_v2  ;;  %v577_v7 = vld [vmem:[%s728_s1 + $0xf0] sm:$0xff]  ;;  %v576_v11 = vld [vmem:[%s728_s1 + $0xe8] sm:$0xff] }
   0x5   :  { %343 = vmatpush.bf16.msra.mxu3 %v578_v3  ;;  %v551_v12 = vld [vmem:[%s728_s1 + $0x20] sm:$0xff]  ;;  %v550_v16 = vld [vmem:[%s728_s1 + $0x18] sm:$0xff]  ;;  %v549_v20 = vld [vmem:[%s728_s1 + $0x10] sm:$0xff] }
   0x6   :  { %302 = vmatpush.bf16.msra.mxu0 %v553_v4  ;;  %v559_v13 = vld [vmem:[%s728_s1 + $0x60] sm:$0xff]  ;;  %v558_v17 = vld [vmem:[%s728_s1 + $0x58] sm:$0xff]  ;;  %v557_v21 = vld [vmem:[%s728_s1 + $0x50] sm:$0xff] }
   0x7   :  { %316 = vmatpush.bf16.msra.mxu1 %v561_v5  ;;  %v567_v14 = vld [vmem:[%s728_s1 + $0xa0] sm:$0xff]  ;;  %v566_v18 = vld [vmem:[%s728_s1 + $0x98] sm:$0xff]  ;;  %v565_v22 = vld [vmem:[%s728_s1 + $0x90] sm:$0xff] }
   0x8   :  { %330 = vmatpush.bf16.msra.mxu2 %v569_v6  ;;  %v575_v15 = vld [vmem:[%s728_s1 + $0xe0] sm:$0xff]  ;;  %v574_v19 = vld [vmem:[%s728_s1 + $0xd8] sm:$0xff]  ;;  %v573_v23 = vld [vmem:[%s728_s1 + $0xd0] sm:$0xff]  ;;  %v383_v6 = vshrl.u32 %v382_v1, 7 }
   0x9   :  { %344 = vmatpush.bf16.msra.mxu3 %v577_v7  ;;  %v548_v24 = vld [vmem:[%s728_s1 + $0x8] sm:$0xff]  ;;  %v547_v28 = vld [vmem:[%s728_s1] sm:$0xff]  ;;  %v545_v33 = vld [vmem:[%s729_s0 + $0xc] sm:$0xf0] }
   0xa   :  { %303 = vmatpush.bf16.msra.mxu0 %v552_v8  ;;  %v556_v25 = vld [vmem:[%s728_s1 + $0x48] sm:$0xff]  ;;  %v555_v29 = vld [vmem:[%s728_s1 + $0x40] sm:$0xff]  ;;  %v403_v35 = vld [vmem:[%s729_s0 + $0x10] sm:$0xf0]  ;;  %vm385_vm0 = vcmp.eq.s32.totalorder %v383_v6, 1  ;;  %vm384_vm1 = vcmp.eq.s32.totalorder %v383_v6, 0 }
   0xb   :  { %317 = vmatpush.bf16.msra.mxu1 %v560_v9  ;;  %v564_v26 = vld [vmem:[%s728_s1 + $0x88] sm:$0xff]  ;;  %v563_v30 = vld [vmem:[%s728_s1 + $0x80] sm:$0xff]  ;;  %v546_v37 = vld [vmem:[%s729_s0 + $0x14] sm:$0xf0] }
   0xc   :  { %331 = vmatpush.bf16.msra.mxu2 %v568_v10  ;;  %v572_v27 = vld [vmem:[%s728_s1 + $0xc8] sm:$0xff]  ;;  %v571_v31 = vld [vmem:[%s728_s1 + $0xc0] sm:$0xff]  ;;  %v411_v39 = vld [vmem:[%s729_s0 + $0x18] sm:$0xf0] }
   0xd   :  { %345 = vmatpush.bf16.msra.mxu3 %v576_v11  ;;  %v401_v32 = vld [vmem:[%s729_s0] sm:$0xf]  ;;  %v543_v34 = vld [vmem:[%s729_s0 + $0x4] sm:$0xf]  ;;  %v409_v36 = vld [vmem:[%s729_s0 + $0x8] sm:$0xf] }
   0xe   :  { %304 = vmatpush.bf16.msra.mxu0 %v551_v12  ;;  %v544_v38 = vld [vmem:[%s729_s0 + $0xc] sm:$0xf]  ;;  %v402_v40 = vor.u32 %v545_v33, %v401_v32  ;;  %v406_v41 = vor.u32 %v543_v34, %v403_v35  ;;  %v410_v42 = vor.u32 %v546_v37, %v409_v36 }
   0xf   :  { %318 = vmatpush.bf16.msra.mxu1 %v559_v13  ;;  %v414_v43 = vor.u32 %v544_v38, %v411_v39 }
  0x10   :  { %332 = vmatpush.bf16.msra.mxu2 %v567_v14 }
  0x11   :  { %346 = vmatpush.bf16.msra.mxu3 %v575_v15 }
  0x12   :  { %305 = vmatpush.bf16.msra.mxu0 %v550_v16 }
  0x13   :  { %319 = vmatpush.bf16.msra.mxu1 %v558_v17 }
  0x14   :  { %333 = vmatpush.bf16.msra.mxu2 %v566_v18 }
  0x15   :  { %347 = vmatpush.bf16.msra.mxu3 %v574_v19 }
  0x16   :  { %306 = vmatpush.bf16.msra.mxu0 %v549_v20 }
  0x17   :  { %320 = vmatpush.bf16.msra.mxu1 %v557_v21 }
  0x18   :  { %334 = vmatpush.bf16.msra.mxu2 %v565_v22 }
  0x19   :  { %348 = vmatpush.bf16.msra.mxu3 %v573_v23 }
  0x1a   :  { %307 = vmatpush.bf16.msra.mxu0 %v548_v24 }
  0x1b   :  { %321 = vmatpush.bf16.msra.mxu1 %v556_v25 }
  0x1c   :  { %335 = vmatpush.bf16.msra.mxu2 %v564_v26 }
  0x1d   :  { %349 = vmatpush.bf16.msra.mxu3 %v572_v27 }
  0x1e   :  { %308 = vmatpush.bf16.msra.mxu0 %v547_v28 }
  0x1f   :  { %322 = vmatpush.bf16.msra.mxu1 %v555_v29 }
  0x20   :  { %336 = vmatpush.bf16.msra.mxu2 %v563_v30 }
  0x21   :  { %350 = vmatpush.bf16.msra.mxu3 %v571_v31  ;;  %309 = vmatmul.bf16.vlgmr.msra.gmra.mxu0 %v402_v40 }
  0x22   :  { %323 = vmatmul.bf16.vlgmr.msra.gmra.mxu1 %v406_v41 }
  0x23   :  { %337 = vmatmul.bf16.vlgmr.msra.gmra.mxu2 %v410_v42 }
  0x24   :  { %351 = vmatmul.bf16.vlgmr.msra.gmra.mxu3 %v414_v43 }
  0x9e   :  { %v310_v44 = vpop.f32.mrf.mxu0 }
  0x9f   :  { %v324_v45 = vpop.f32.mrf.mxu1 }
  0xa0   :  { %v325_v46 = vadd.f32 %v324_v45, %v310_v44 }
  0xa6   :  { %v338_v47 = vpop.f32.mrf.mxu2  ;;  %v312_v51 = vpop.f32.mrf.mxu0 }
  0xa7   :  { %v352_v48 = vpop.f32.mrf.mxu3  ;;  %v339_v49 = vadd.f32 %v338_v47, %v325_v46  ;;  %v326_v52 = vpop.f32.mrf.mxu1 }
  0xa8   :  { %v327_v53 = vadd.f32 %v326_v52, %v312_v51 }
  0xa9   :  { %v353_v50 = vadd.f32 %v352_v48, %v339_v49 }
  0xab   :  { %389 = vst [vmem:[%s730_s2] sm:$0xff] %v353_v50  ;;  %v373_v58 = vmul.f32 %v353_v50, %v353_v50 }
  0xae   :  { %v340_v54 = vpop.f32.mrf.mxu2 }
  0xaf   :  { %v341_v55 = vadd.f32 %v340_v54, %v327_v53  ;;  %v354_v56 = vpop.f32.mrf.mxu3 }
  0xb1   :  { %v355_v57 = vadd.f32 %v354_v56, %v341_v55 }
  0xb3   :  { %v366_v59 = vadd.f32 %v355_v57, %v353_v50  ;;  %v374_v60 = vmul.f32 %v355_v57, %v355_v57  ;;  %390 = vst [vmem:[%s730_s2 + $0x8] sm:$0xff] %v355_v57 }
  0xb5   :  { %v367_v61 = vrot.slane %v366_v59, 4  ;;  %v375_v62 = vadd.f32 %v374_v60, %v373_v58 }
  0xb7   :  { %v368_v63 = vadd.f32 %v367_v61, %v366_v59  ;;  %v376_v0 = vrot.slane %v375_v62, 4 }
  0xb9   :  { %v369_v2 = vrot.slane %v368_v63, 2  ;;  %v377_v3 = vadd.f32 %v376_v0, %v375_v62 }
  0xbb   :  { %v370_v4 = vadd.f32 %v369_v2, %v368_v63  ;;  %v378_v5 = vrot.slane %v377_v3, 2 }
  0xbd   :  { %v379_v7 = vadd.f32 %v378_v5, %v377_v3  ;;  %v371_v8 = vrot.slane %v370_v4, 1 }
  0xbf   :  { %v380_v9 = vrot.slane %v379_v7, 1  ;;  %v372_v11 = vadd.f32 %v371_v8, %v370_v4 }
  0xc1   :  { %v381_v10 = vadd.f32 %v380_v9, %v379_v7 }
  0xc3   :  { %v386_v12 = vsel %vm385_vm0, %v381_v10, 0.0 }
  0xc4   :  { %v387_v13 = vsel %vm384_vm1, %v372_v11, %v386_v12 }
  0xc5   :  { %388 = vst [vmem:[%s731_s3] sm:$0xff] %v387_v13 }

// kernel: _lambda_.13
= control target key start
LH: loop header
LB: loop body
LE: loop exit
PB: predicated region body
PF: predicated region fallthrough
CT: control target
= control target key end

     0   :  { %s1265_s12 = smov 0   ;;  %s1267_s13 = smov 0   ;;  %s1418_s0 = inlined_call_operand.vmem [shape: bf16[56,1024], index: 0, kind: input, shape index: {}]   ;;  %s1419_s1 = inlined_call_operand.vmem [shape: bf16[1024,128], index: 1, kind: input, shape index: {}]   ;;  %s1420_s2 = inlined_call_operand.vmem [shape: f32[56,128], index: 2, kind: output, shape index: {0}]   ;;  %s1421_s3 = inlined_call_operand.vmem [shape: f32[8,128], index: 3, kind: output, shape index: {1}]  }
   0x1   :  { %s1269_s14 = smov 0   ;;  %s1271_s15 = smov 0  }
   0x2   :  { %s1273_s16 = smov 0  }
   0x3 LB: > { %s23_s17 = sadd.s32 1, %s1238_s15  ;;  %p42_p1 = scmp.ne.s32.totalorder %s1230_s13, %s1226_s12  ;;  %s1242_s16 = sphi %s1273_s16, %s14_s16   ;;  %s1238_s15 = sphi %s1271_s15, %s1425_s15   ;;  %s1234_s14 = sphi %s1269_s14, %s1424_s14   ;;  %s1230_s13 = sphi %s1267_s13, %s1423_s13   ;;  %s1226_s12 = sphi %s1265_s12, %s1422_s12  }
   0x4   : > { %p24_p0 = scmp.ge.s32.totalorder %s23_s17, 2  ;;  %p43_p2 = scmp.eq.s32.totalorder %s1242_s16, 0 }
   0x5   : > { %s35_s19 = sadd.s32 1, %s1230_s13  ;;  %p927_p5 = scmp.ge.s32.totalorder %s1242_s16, 2 }
   0x6   : > { %s1427_s17 = smov (%p24_p0, %s23_s17), 0  ;;  %p44_p3 = por %p43_p2, %p42_p1 }
   0x7   : > { %s31_s18 = ssub.s32 %s1238_s15, %s1427_s17  ;;  %146 = sbr.rel (%p927_p5) target bundleno = 30 (0x1e), region = 16 }
   0x8   : > { %p33_p4 = scmp.eq.s32.totalorder %s31_s18, 0 }
   0xa   : > { %s1300_s20 = scalar_select %p33_p4, %s1230_s13, %s35_s19  }
   0xc   : > { %149 = sbr.rel (!%p44_p3) target bundleno = 30 (0x1e), region = 20  ;;  %s151_s21 = sand.u32 (%p44_p3), 1, %s1230_s13  }
   0xd   : > { %s1116_s22 = sshll.u32 (%p44_p3), %s1238_s15, 4  ;;  %s1161_s23 = smul.u32 (%p44_p3), 112, %s151_s21 }
   0xe   : > { %s159_s26 = scalar_lea.vmem (%p44_p3), %s1418_s0, %s1116_s22 }
   0xf   : > { %v172_v0 = vld [vmem:[%s159_s26] sm:$0xff] (%p44_p3)  ;;  %v174_v1 = vld [vmem:[%s159_s26 + $0x8] sm:$0xff] (%p44_p3)  ;;  %s153_s27 = scalar_lea.vmem (%p44_p3), [#allocation3], %s1161_s23 }
  0x10   : > { %v176_v2 = vld [vmem:[%s159_s26 + $0x20] sm:$0xff] (%p44_p3)  ;;  %173 = vst [vmem:[%s153_s27] sm:$0xff] (%p44_p3), %v172_v0  ;;  %v178_v3 = vld [vmem:[%s159_s26 + $0x28] sm:$0xff] (%p44_p3) }
  0x11   : > { %175 = vst [vmem:[%s153_s27 + $0x8] sm:$0xff] %v174_v1  ;;  %v180_v4 = vld [vmem:[%s159_s26 + $0x40] sm:$0xff]  ;;  %v182_v5 = vld [vmem:[%s159_s26 + $0x48] sm:$0xff] }
  0x12   : > { %177 = vst [vmem:[%s153_s27 + $0x10] sm:$0xff] %v176_v2  ;;  %v184_v6 = vld [vmem:[%s159_s26 + $0x60] sm:$0xff]  ;;  %v186_v7 = vld [vmem:[%s159_s26 + $0x68] sm:$0xff] }
  0x13   : > { %179 = vst [vmem:[%s153_s27 + $0x18] sm:$0xff] %v178_v3  ;;  %v188_v8 = vld [vmem:[%s159_s26 + $0x80] sm:$0xff]  ;;  %v190_v9 = vld [vmem:[%s159_s26 + $0x88] sm:$0xff] }
  0x14   : > { %181 = vst [vmem:[%s153_s27 + $0x20] sm:$0xff] %v180_v4  ;;  %v192_v10 = vld [vmem:[%s159_s26 + $0xa0] sm:$0xff]  ;;  %v194_v11 = vld [vmem:[%s159_s26 + $0xa8] sm:$0xff] }
  0x15   : > { %183 = vst [vmem:[%s153_s27 + $0x28] sm:$0xff] %v182_v5  ;;  %v196_v12 = vld [vmem:[%s159_s26 + $0xc0] sm:$0xff]  ;;  %v198_v13 = vld [vmem:[%s159_s26 + $0xc8] sm:$0xff] }
  0x16   : > { %185 = vst [vmem:[%s153_s27 + $0x30] sm:$0xff] %v184_v6 }
  0x17   : > { %187 = vst [vmem:[%s153_s27 + $0x38] sm:$0xff] %v186_v7 }
  0x18   : > { %189 = vst [vmem:[%s153_s27 + $0x40] sm:$0xff] %v188_v8 }
  0x19   : > { %191 = vst [vmem:[%s153_s27 + $0x48] sm:$0xff] %v190_v9 }
  0x1a   : > { %193 = vst [vmem:[%s153_s27 + $0x50] sm:$0xff] %v192_v10 }
  0x1b   : > { %195 = vst [vmem:[%s153_s27 + $0x58] sm:$0xff] %v194_v11 }
  0x1c   : > { %197 = vst [vmem:[%s153_s27 + $0x60] sm:$0xff] %v196_v12 }
  0x1d   : > { %199 = vst [vmem:[%s153_s27 + $0x68] sm:$0xff] %v198_v13 }
  0x1e PF: > { %p930_p6 = scmp.ge.s32.totalorder %s1242_s16, 1  ;;  %p213_p7 = scmp.lt.s32.totalorder %s1242_s16, 3 }
  0x20   : > { %p214_p8 = pnand %p930_p6, %p213_p7 }
  0x21   : > { %s220_s28 = sand.u32 (!%p214_p8), 1, %s1226_s12   ;;  %s931_s29 = sshll.u32 (!%p214_p8), %s1234_s14, 6 }
  0x22   : > { %217 = sbr.rel (%p214_p8) target bundleno = 305 (0x131), region = 47  ;;  %p255_p9 = scmp.lt.s32.totalorder (!%p214_p8), %s931_s29, 127 }
  0x23   : > { %s1162_s30 = smul.u32 (!%p214_p8), 112, %s220_s28  ;;  %p933_p10 = scmp.ne.s32.totalorder (!%p214_p8), %s1234_s14, 0 }
  0x25   : > { %s1317_s8 = scalar_lea.vmem (!%p214_p8), [#allocation3], %s1162_s30 }
  0x27   : > { %s1429_s29 = smov (!%p255_p9, %s931_s29), 127  ;;  %273 = sbr.rel (%p933_p10) target bundleno = 52 (0x34), region = 55 }
  0x28   : > { %s932_s4 = sshll.u32 %s1429_s29, 2 }
  0x29   : > { %s1315_s7 = scalar_lea.vmem %s1419_s1, %s932_s4 }
  0x2c   : > { %v1244_v14 = vmov 0.0  }
  0x2d   : > { %274 = vst [vmem:[#allocation2 + $0x30] sm:$0xff] %v1244_v14 }
  0x2e   : > { %275 = vst [vmem:[#allocation2] sm:$0xff] %v1244_v14 }
  0x2f   : > { %276 = vst [vmem:[#allocation2 + $0x18] sm:$0xff] %v1244_v14 }
  0x30   : > { %277 = vst [vmem:[#allocation2 + $0x10] sm:$0xff] %v1244_v14 }
  0x31   : > { %278 = vst [vmem:[#allocation2 + $0x8] sm:$0xff] %v1244_v14 }
  0x32   : > { %279 = vst [vmem:[#allocation2 + $0x20] sm:$0xff] %v1244_v14 }
  0x33   : > { %280 = vst [vmem:[#allocation2 + $0x28] sm:$0xff] %v1244_v14 }
  0x34 PF: > { %v1136_v15 = vld [vmem:[%s1315_s7 + $0x38] sm:$0xff]  ;;  %v1135_v19 = vld [vmem:[%s1315_s7 + $0x30] sm:$0xff]  ;;  %v1134_v23 = vld [vmem:[%s1315_s7 + $0x28] sm:$0xff]  ;;  %p1110_p11 = scmp.ne.s32.totalorder %s1234_s14, 1 }
  0x35   : > { %v1144_v16 = vld [vmem:[%s1315_s7 + $0x78] sm:$0xff]  ;;  %632 = vmatpush.bf16.msra.mxu0 %v1136_v15  ;;  %v1143_v20 = vld [vmem:[%s1315_s7 + $0x70] sm:$0xff]  ;;  %v1142_v24 = vld [vmem:[%s1315_s7 + $0x68] sm:$0xff] }
  0x36   : > { %v1152_v17 = vld [vmem:[%s1315_s7 + $0xb8] sm:$0xff]  ;;  %660 = vmatpush.bf16.msra.mxu1 %v1144_v16  ;;  %v1151_v21 = vld [vmem:[%s1315_s7 + $0xb0] sm:$0xff]  ;;  %v1150_v25 = vld [vmem:[%s1315_s7 + $0xa8] sm:$0xff] }
  0x37   : > { %v1160_v18 = vld [vmem:[%s1315_s7 + $0xf8] sm:$0xff]  ;;  %688 = vmatpush.bf16.msra.mxu2 %v1152_v17  ;;  %v1159_v22 = vld [vmem:[%s1315_s7 + $0xf0] sm:$0xff]  ;;  %v1158_v26 = vld [vmem:[%s1315_s7 + $0xe8] sm:$0xff] }
  0x38   : > { %716 = vmatpush.bf16.msra.mxu3 %v1160_v18  ;;  %v1133_v27 = vld [vmem:[%s1315_s7 + $0x20] sm:$0xff]  ;;  %v1132_v31 = vld [vmem:[%s1315_s7 + $0x18] sm:$0xff]  ;;  %v1131_v35 = vld [vmem:[%s1315_s7 + $0x10] sm:$0xff] }
  0x39   : > { %633 = vmatpush.bf16.msra.mxu0 %v1135_v19  ;;  %v1141_v28 = vld [vmem:[%s1315_s7 + $0x60] sm:$0xff]  ;;  %v1140_v32 = vld [vmem:[%s1315_s7 + $0x58] sm:$0xff]  ;;  %v1139_v36 = vld [vmem:[%s1315_s7 + $0x50] sm:$0xff] }
  0x3a   : > { %661 = vmatpush.bf16.msra.mxu1 %v1143_v20  ;;  %v1149_v29 = vld [vmem:[%s1315_s7 + $0xa0] sm:$0xff]  ;;  %v1148_v33 = vld [vmem:[%s1315_s7 + $0x98] sm:$0xff]  ;;  %v1147_v37 = vld [vmem:[%s1315_s7 + $0x90] sm:$0xff] }
  0x3b   : > { %689 = vmatpush.bf16.msra.mxu2 %v1151_v21  ;;  %v1157_v30 = vld [vmem:[%s1315_s7 + $0xe0] sm:$0xff]  ;;  %v1156_v34 = vld [vmem:[%s1315_s7 + $0xd8] sm:$0xff]  ;;  %v1155_v38 = vld [vmem:[%s1315_s7 + $0xd0] sm:$0xff] }
  0x3c   : > { %717 = vmatpush.bf16.msra.mxu3 %v1159_v22  ;;  %v1130_v39 = vld [vmem:[%s1315_s7 + $0x8] sm:$0xff]  ;;  %v1129_v43 = vld [vmem:[%s1315_s7] sm:$0xff] }
  0x3d   : > { %634 = vmatpush.bf16.msra.mxu0 %v1134_v23  ;;  %v1138_v40 = vld [vmem:[%s1315_s7 + $0x48] sm:$0xff]  ;;  %v1137_v44 = vld [vmem:[%s1315_s7 + $0x40] sm:$0xff] }
  0x3e   : > { %662 = vmatpush.bf16.msra.mxu1 %v1142_v24  ;;  %v1146_v41 = vld [vmem:[%s1315_s7 + $0x88] sm:$0xff]  ;;  %v1145_v45 = vld [vmem:[%s1315_s7 + $0x80] sm:$0xff] }
  0x3f   : > { %690 = vmatpush.bf16.msra.mxu2 %v1150_v25  ;;  %v1154_v42 = vld [vmem:[%s1315_s7 + $0xc8] sm:$0xff]  ;;  %v1153_v46 = vld [vmem:[%s1315_s7 + $0xc0] sm:$0xff] }
  0x40   : > { %718 = vmatpush.bf16.msra.mxu3 %v1158_v26  ;;  %v936_v47 = vld [vmem:[%s1317_s8] sm:$0xf]  ;;  %v1119_v48 = vld [vmem:[%s1317_s8 + $0xc] sm:$0xf0]  ;;  %v1117_v49 = vld [vmem:[%s1317_s8 + $0x4] sm:$0xf] }
  0x41   : > { %635 = vmatpush.bf16.msra.mxu0 %v1133_v27  ;;  %v938_v50 = vld [vmem:[%s1317_s8 + $0x10] sm:$0xf0]  ;;  %v944_v51 = vld [vmem:[%s1317_s8 + $0x8] sm:$0xf]  ;;  %v1120_v52 = vld [vmem:[%s1317_s8 + $0x14] sm:$0xf0]  ;;  %v937_v55 = vor.u32 %v1119_v48, %v936_v47 }
  0x42   : > { %663 = vmatpush.bf16.msra.mxu1 %v1141_v28  ;;  %v1118_v53 = vld [vmem:[%s1317_s8 + $0xc] sm:$0xf]  ;;  %v946_v54 = vld [vmem:[%s1317_s8 + $0x18] sm:$0xf0]  ;;  %v941_v56 = vor.u32 %v1117_v49, %v938_v50  ;;  %v945_v57 = vor.u32 %v1120_v52, %v944_v51  ;;  %v952_v59 = vld [vmem:[%s1317_s8 + $0x20] sm:$0xf] }
  0x43   : > { %691 = vmatpush.bf16.msra.mxu2 %v1149_v29  ;;  %v949_v58 = vor.u32 %v1118_v53, %v946_v54  ;;  %v1123_v60 = vld [vmem:[%s1317_s8 + $0x2c] sm:$0xf0]  ;;  %v1121_v61 = vld [vmem:[%s1317_s8 + $0x24] sm:$0xf]  ;;  %v954_v62 = vld [vmem:[%s1317_s8 + $0x30] sm:$0xf0] }
  0x44   : > { %719 = vmatpush.bf16.msra.mxu3 %v1157_v30  ;;  %v960_v63 = vld [vmem:[%s1317_s8 + $0x28] sm:$0xf]  ;;  %v1124_v0 = vld [vmem:[%s1317_s8 + $0x34] sm:$0xf0]  ;;  %v1122_v1 = vld [vmem:[%s1317_s8 + $0x2c] sm:$0xf]  ;;  %v953_v3 = vor.u32 %v1123_v60, %v952_v59  ;;  %v957_v4 = vor.u32 %v1121_v61, %v954_v62 }
  0x45   : > { %636 = vmatpush.bf16.msra.mxu0 %v1132_v31  ;;  %v962_v2 = vld [vmem:[%s1317_s8 + $0x38] sm:$0xf0]  ;;  %v961_v5 = vor.u32 %v1124_v0, %v960_v63  ;;  %v968_v7 = vld [vmem:[%s1317_s8 + $0x40] sm:$0xf]  ;;  %v1127_v8 = vld [vmem:[%s1317_s8 + $0x4c] sm:$0xf0] }
  0x46   : > { %664 = vmatpush.bf16.msra.mxu1 %v1140_v32  ;;  %v965_v6 = vor.u32 %v1122_v1, %v962_v2  ;;  %v1125_v9 = vld [vmem:[%s1317_s8 + $0x44] sm:$0xf]  ;;  %v970_v10 = vld [vmem:[%s1317_s8 + $0x50] sm:$0xf0]  ;;  %v976_v11 = vld [vmem:[%s1317_s8 + $0x48] sm:$0xf]  ;;  %v969_v15 = vor.u32 %v1127_v8, %v968_v7 }
  0x47   : > { %692 = vmatpush.bf16.msra.mxu2 %v1148_v33  ;;  %v1128_v12 = vld [vmem:[%s1317_s8 + $0x54] sm:$0xf0]  ;;  %v1126_v13 = vld [vmem:[%s1317_s8 + $0x4c] sm:$0xf]  ;;  %v978_v14 = vld [vmem:[%s1317_s8 + $0x58] sm:$0xf0]  ;;  %v973_v16 = vor.u32 %v1125_v9, %v970_v10 }
  0x48   : > { %720 = vmatpush.bf16.msra.mxu3 %v1156_v34  ;;  %v977_v17 = vor.u32 %v1128_v12, %v976_v11  ;;  %v981_v18 = vor.u32 %v1126_v13, %v978_v14  ;;  %v300_v19 = vld [vmem:[%s1317_s8 + $0x60] sm:$0xff]  ;;  %v301_v20 = vld [vmem:[%s1317_s8 + $0x68] sm:$0xff] }
  0x49   : > { %637 = vmatpush.bf16.msra.mxu0 %v1131_v35  ;;  %v404_v21 = vunpack.c.l.b16 %v300_v19  ;;  %v405_v22 = vunpack.c.h.b16 %v300_v19  ;;  %v406_v23 = vunpack.c.l.b16 %v301_v20  ;;  %v407_v24 = vunpack.c.h.b16 %v301_v20  ;;  %v284_v0 = vld [vmem:[#allocation2 + $0x10] sm:$0xff]  ;;  %v285_v9 = vld [vmem:[#allocation2 + $0x8] sm:$0xff] }
  0x4a   : > { %665 = vmatpush.bf16.msra.mxu1 %v1139_v36 }
  0x4b   : > { %693 = vmatpush.bf16.msra.mxu2 %v1147_v37  ;;  %v420_v25 = vpack.c.b16 %v404_v21, %v404_v21  ;;  %v421_v26 = vpack.c.b16 %v405_v22, %v405_v22  ;;  %v422_v27 = vpack.c.b16 %v406_v23, %v406_v23  ;;  %v423_v28 = vpack.c.b16 %v407_v24, %v407_v24  ;;  %v281_v37 = vld [vmem:[#allocation2 + $0x30] sm:$0xff] }
  0x4c   : > { %721 = vmatpush.bf16.msra.mxu3 %v1155_v38 }
  0x4d   : > { %638 = vmatpush.bf16.msra.mxu0 %v1130_v39 }
  0x4e   : > { %666 = vmatpush.bf16.msra.mxu1 %v1138_v40 }
  0x4f   : > { %694 = vmatpush.bf16.msra.mxu2 %v1146_v41 }
  0x50   : > { %722 = vmatpush.bf16.msra.mxu3 %v1154_v42 }
  0x51   : > { %639 = vmatpush.bf16.msra.mxu0 %v1129_v43 }
  0x52   : > { %667 = vmatpush.bf16.msra.mxu1 %v1137_v44 }
  0x53   : > { %695 = vmatpush.bf16.msra.mxu2 %v1145_v45 }
  0x54   : > { %723 = vmatpush.bf16.msra.mxu3 %v1153_v46  ;;  %640 = vmatmul.bf16.vlgmr.msra.gmra.mxu0 %v937_v55  ;;  %v282_v46 = vld [vmem:[#allocation2] sm:$0xff]  ;;  %v283_v55 = vld [vmem:[#allocation2 + $0x18] sm:$0xff] }
  0x55   : > { %668 = vmatmul.bf16.vlgmr.msra.gmra.mxu1 %v941_v56 }
  0x56   : > { %696 = vmatmul.bf16.vlgmr.msra.gmra.mxu2 %v945_v57 }
  0x57   : > { %724 = vmatmul.bf16.vlgmr.msra.gmra.mxu3 %v949_v58 }
  0x64   : > { %645 = vmatmul.bf16.gmra.mxu0 %v953_v3 }
  0x65   : > { %673 = vmatmul.bf16.gmra.mxu1 %v957_v4 }
  0x66   : > { %701 = vmatmul.bf16.gmra.mxu2 %v961_v5 }
  0x67   : > { %729 = vmatmul.bf16.gmra.mxu3 %v965_v6 }
  0x74   : > { %650 = vmatmul.bf16.gmra.mxu0 %v969_v15 }
  0x75   : > { %678 = vmatmul.bf16.gmra.mxu1 %v973_v16 }
  0x76   : > { %706 = vmatmul.bf16.gmra.mxu2 %v977_v17 }
  0x77   : > { %734 = vmatmul.bf16.gmra.mxu3 %v981_v18  ;;  %v286_v18 = vld [vmem:[#allocation2 + $0x20] sm:$0xff] }
  0x84   : > { %655 = vmatmul.bf16.gmra.mxu0 %v420_v25 }
  0x85   : > { %683 = vmatmul.bf16.gmra.mxu1 %v421_v26 }
  0x86   : > { %711 = vmatmul.bf16.gmra.mxu2 %v422_v27  ;;  %v287_v27 = vld [vmem:[#allocation2 + $0x28] sm:$0xff] }
  0x87   : > { %739 = vmatmul.bf16.gmra.mxu3 %v423_v28 }
  0xd1   : > { %v641_v29 = vpop.f32.mrf.mxu0 }
  0xd2   : > { %v669_v30 = vpop.f32.mrf.mxu1 }
  0xd3   : > { %v670_v31 = vadd.f32 %v669_v30, %v641_v29 }
  0xd9   : > { %v697_v32 = vpop.f32.mrf.mxu2  ;;  %v643_v35 = vpop.f32.mrf.mxu0 }
  0xda   : > { %v725_v33 = vpop.f32.mrf.mxu3  ;;  %v698_v34 = vadd.f32 %v697_v32, %v670_v31  ;;  %v671_v36 = vpop.f32.mrf.mxu1 }
  0xdb   : > { %v672_v40 = vadd.f32 %v671_v36, %v643_v35 }
  0xdc   : > { %v726_v38 = vadd.f32 %v725_v33, %v698_v34 }
  0xde   : > { %v744_v39 = vadd.f32 %v726_v38, %v281_v37 }
  0xe0   : > { %751 = vst [vmem:[#allocation2 + $0x30] sm:$0xff] %v744_v39 }
  0xe1   : > { %v699_v41 = vpop.f32.mrf.mxu2  ;;  %v646_v44 = vpop.f32.mrf.mxu0 }
  0xe2   : > { %v727_v42 = vpop.f32.mrf.mxu3  ;;  %v700_v43 = vadd.f32 %v699_v41, %v672_v40  ;;  %v674_v45 = vpop.f32.mrf.mxu1 }
  0xe3   : > { %v675_v49 = vadd.f32 %v674_v45, %v646_v44 }
  0xe4   : > { %v728_v47 = vadd.f32 %v727_v42, %v700_v43 }
  0xe6   : > { %v745_v48 = vadd.f32 %v728_v47, %v282_v46 }
  0xe8   : > { %752 = vst [vmem:[#allocation2] sm:$0xff] %v745_v48 }
  0xe9   : > { %v702_v50 = vpop.f32.mrf.mxu2  ;;  %v648_v53 = vpop.f32.mrf.mxu0 }
  0xea   : > { %v730_v51 = vpop.f32.mrf.mxu3  ;;  %v703_v52 = vadd.f32 %v702_v50, %v675_v49  ;;  %v676_v54 = vpop.f32.mrf.mxu1 }
  0xeb   : > { %v677_v58 = vadd.f32 %v676_v54, %v648_v53 }
  0xec   : > { %v731_v56 = vadd.f32 %v730_v51, %v703_v52 }
  0xee   : > { %v746_v57 = vadd.f32 %v731_v56, %v283_v55 }
  0xf0   : > { %753 = vst [vmem:[#allocation2 + $0x18] sm:$0xff] %v746_v57 }
  0xf1   : > { %v704_v59 = vpop.f32.mrf.mxu2  ;;  %v651_v62 = vpop.f32.mrf.mxu0 }
  0xf2   : > { %v732_v60 = vpop.f32.mrf.mxu3  ;;  %v705_v61 = vadd.f32 %v704_v59, %v677_v58  ;;  %v679_v63 = vpop.f32.mrf.mxu1 }
  0xf3   : > { %v680_v3 = vadd.f32 %v679_v63, %v651_v62 }
  0xf4   : > { %v733_v1 = vadd.f32 %v732_v60, %v705_v61 }
  0xf6   : > { %v747_v2 = vadd.f32 %v733_v1, %v284_v0 }
  0xf8   : > { %754 = vst [vmem:[#allocation2 + $0x10] sm:$0xff] %v747_v2 }
  0xf9   : > { %v707_v4 = vpop.f32.mrf.mxu2  ;;  %v653_v7 = vpop.f32.mrf.mxu0 }
  0xfa   : > { %v735_v5 = vpop.f32.mrf.mxu3  ;;  %v708_v6 = vadd.f32 %v707_v4, %v680_v3  ;;  %v681_v8 = vpop.f32.mrf.mxu1 }
  0xfb   : > { %v682_v12 = vadd.f32 %v681_v8, %v653_v7 }
  0xfc   : > { %v736_v10 = vadd.f32 %v735_v5, %v708_v6 }
  0xfe   : > { %v748_v11 = vadd.f32 %v736_v10, %v285_v9 }
 0x100   : > { %755 = vst [vmem:[#allocation2 + $0x8] sm:$0xff] %v748_v11 }
 0x101   : > { %v709_v13 = vpop.f32.mrf.mxu2  ;;  %v656_v16 = vpop.f32.mrf.mxu0 }
 0x102   : > { %v737_v14 = vpop.f32.mrf.mxu3  ;;  %v710_v15 = vadd.f32 %v709_v13, %v682_v12  ;;  %v684_v17 = vpop.f32.mrf.mxu1 }
 0x103   : > { %v685_v21 = vadd.f32 %v684_v17, %v656_v16 }
 0x104   : > { %v738_v19 = vadd.f32 %v737_v14, %v710_v15 }
 0x106   : > { %v749_v20 = vadd.f32 %v738_v19, %v286_v18 }
 0x108   : > { %756 = vst [vmem:[#allocation2 + $0x20] sm:$0xff] %v749_v20 }
 0x109   : > { %v712_v22 = vpop.f32.mrf.mxu2  ;;  %v658_v25 = vpop.f32.mrf.mxu0 }
 0x10a   : > { %v740_v23 = vpop.f32.mrf.mxu3  ;;  %v713_v24 = vadd.f32 %v712_v22, %v685_v21  ;;  %v686_v26 = vpop.f32.mrf.mxu1 }
 0x10c   : > { %v741_v28 = vadd.f32 %v740_v23, %v713_v24 }
 0x10e   : > { %v750_v29 = vadd.f32 %v741_v28, %v287_v27  ;;  %761 = sbr.rel (%p1110_p11) target bundleno = 305 (0x131), region = 59 }
 0x110   : > { %757 = vst [vmem:[#allocation2 + $0x28] sm:$0xff] %v750_v29 }
 0x111   : > { %v714_v30 = vpop.f32.mrf.mxu2 }
 0x112   : > { %v742_v31 = vpop.f32.mrf.mxu3 }
 0x113   : > { %v762_v32 = vld [vmem:[#allocation2 + $0x30] sm:$0xff]  ;;  %v763_v33 = vld [vmem:[#allocation2] sm:$0xff]  ;;  %v764_v34 = vld [vmem:[#allocation2 + $0x18] sm:$0xff]  ;;  %v800_v61 = vlaneseq }
 0x114   : > { %v765_v35 = vld [vmem:[#allocation2 + $0x10] sm:$0xff]  ;;  %v769_v36 = vadd.f32 %v763_v33, %v762_v32  ;;  %v781_v37 = vmul.f32 %v762_v32, %v762_v32  ;;  %v782_v38 = vmul.f32 %v763_v33, %v763_v33  ;;  %v783_v39 = vmul.f32 %v764_v34, %v764_v34  ;;  %807 = vst [vmem:[%s1420_s2] sm:$0xff] %v762_v32  ;;  %v766_v40 = vld [vmem:[#allocation2 + $0x8] sm:$0xff]  ;;  %v767_v44 = vld [vmem:[#allocation2 + $0x20] sm:$0xff] }
 0x115   : > { %808 = vst [vmem:[%s1420_s2 + $0x8] sm:$0xff] %v763_v33  ;;  %v784_v42 = vmul.f32 %v765_v35, %v765_v35  ;;  %v785_v46 = vmul.f32 %v766_v40, %v766_v40  ;;  %v786_v50 = vmul.f32 %v767_v44, %v767_v44  ;;  %v801_v2 = vshrl.u32 %v800_v61, 7 }
 0x116   : > { %v770_v41 = vadd.f32 %v769_v36, %v764_v34  ;;  %v788_v43 = vadd.f32 %v782_v38, %v781_v37  ;;  %809 = vst [vmem:[%s1420_s2 + $0x10] sm:$0xff] %v764_v34 }
 0x117   : > { %810 = vst [vmem:[%s1420_s2 + $0x18] sm:$0xff] %v765_v35  ;;  %v768_v48 = vld [vmem:[#allocation2 + $0x28] sm:$0xff]  ;;  %vm803_vm0 = vcmp.eq.s32.totalorder %v801_v2, 1  ;;  %vm802_vm1 = vcmp.eq.s32.totalorder %v801_v2, 0 }
 0x118   : > { %v771_v45 = vadd.f32 %v770_v41, %v765_v35  ;;  %v789_v47 = vadd.f32 %v788_v43, %v783_v39  ;;  %811 = vst [vmem:[%s1420_s2 + $0x20] sm:$0xff] %v766_v40  ;;  %v787_v53 = vmul.f32 %v768_v48, %v768_v48 }
 0x119   : > { %812 = vst [vmem:[%s1420_s2 + $0x28] sm:$0xff] %v767_v44 }
 0x11a   : > { %v772_v49 = vadd.f32 %v771_v45, %v766_v40  ;;  %v790_v51 = vadd.f32 %v789_v47, %v784_v42  ;;  %813 = vst [vmem:[%s1420_s2 + $0x30] sm:$0xff] %v768_v48 }
 0x11c   : > { %v773_v52 = vadd.f32 %v772_v49, %v767_v44  ;;  %v791_v54 = vadd.f32 %v790_v51, %v785_v46 }
 0x11e   : > { %v774_v55 = vadd.f32 %v773_v52, %v768_v48  ;;  %v792_v56 = vadd.f32 %v791_v54, %v786_v50 }
 0x120   : > { %v775_v57 = vrot.slane %v774_v55, 4  ;;  %v793_v58 = vadd.f32 %v792_v56, %v787_v53 }
 0x122   : > { %v776_v59 = vadd.f32 %v775_v57, %v774_v55  ;;  %v794_v60 = vrot.slane %v793_v58, 4 }
 0x124   : > { %v777_v62 = vrot.slane %v776_v59, 2  ;;  %v795_v63 = vadd.f32 %v794_v60, %v793_v58 }
 0x126   : > { %v778_v0 = vadd.f32 %v777_v62, %v776_v59  ;;  %v796_v1 = vrot.slane %v795_v63, 2 }
 0x128   : > { %v779_v3 = vrot.slane %v778_v0, 1  ;;  %v797_v4 = vadd.f32 %v796_v1, %v795_v63 }
 0x12a   : > { %v798_v5 = vrot.slane %v797_v4, 1  ;;  %v780_v6 = vadd.f32 %v779_v3, %v778_v0 }
 0x12c   : > { %v799_v7 = vadd.f32 %v798_v5, %v797_v4 }
 0x12e   : > { %v804_v8 = vsel %vm803_vm0, %v799_v7, 0.0 }
 0x12f   : > { %v805_v9 = vsel %vm802_vm1, %v780_v6, %v804_v8 }
 0x130   : > { %806 = vst [vmem:[%s1421_s3] sm:$0xff] %v805_v9 }
 0x131 PF: > { %s14_s16 = sadd.s32 1, %s1242_s16   ;;  %s1422_s12 = smov %s1230_s13 }
 0x132   : > { %p11_p12 = scmp.ge.s32.totalorder %s14_s16, 4   ;;  %s1423_s13 = smov %s1300_s20 }
 0x133   : > { %s1424_s14 = smov %s1238_s15  ;;  %s1425_s15 = smov %s1427_s17 }
 0x134   :  { %13 = sbr.rel (!%p11_p12) target bundleno = 3 (0x3), region = 109 }

// kernel: _lambda_.15
= control target key start
LH: loop header
LB: loop body
LE: loop exit
PB: predicated region body
PF: predicated region fallthrough
CT: control target
= control target key end

     0   :  { %s1586_s12 = smov 0   ;;  %s1588_s13 = smov 0   ;;  %s1872_s0 = inlined_call_operand.vmem [shape: bf16[128,2048], index: 0, kind: input, shape index: {}]   ;;  %s1873_s1 = inlined_call_operand.vmem [shape: bf16[2048,128], index: 1, kind: input, shape index: {}]   ;;  %s1874_s2 = inlined_call_operand.vmem [shape: f32[1,128], index: 2, kind: input, shape index: {}]   ;;  %s1875_s3 = inlined_call_operand.vmem [shape: f32[128,128], index: 3, kind: output, shape index: {}]  }
   0x1   :  { %s1590_s14 = smov 0   ;;  %s1592_s15 = smov 0  }
   0x2   :  { %s1594_s16 = smov 0  }
   0x3 LB: > { %s22_s17 = sadd.s32 1, %s1559_s15  ;;  %p41_p1 = scmp.ne.s32.totalorder %s1551_s13, %s1547_s12  ;;  %s1563_s16 = sphi %s1594_s16, %s13_s16   ;;  %s1559_s15 = sphi %s1592_s15, %s1879_s15   ;;  %s1555_s14 = sphi %s1590_s14, %s1878_s14   ;;  %s1551_s13 = sphi %s1588_s13, %s1877_s13   ;;  %s1547_s12 = sphi %s1586_s12, %s1876_s12  }
   0x4   : > { %p23_p0 = scmp.ge.s32.totalorder %s22_s17, 4  ;;  %p42_p2 = scmp.eq.s32.totalorder %s1563_s16, 0 }
   0x5   : > { %s34_s19 = sadd.s32 1, %s1551_s13  ;;  %p1148_p5 = scmp.ge.s32.totalorder %s1563_s16, 4 }
   0x6   : > { %s1881_s17 = smov (%p23_p0, %s22_s17), 0  ;;  %p43_p3 = por %p42_p2, %p41_p1 }
   0x7   : > { %s30_s18 = ssub.s32 %s1559_s15, %s1881_s17  ;;  %143 = sbr.rel (%p1148_p5) target bundleno = 48 (0x30), region = 20 }
   0x8   : > { %p32_p4 = scmp.eq.s32.totalorder %s30_s18, 0 }
   0xa   : > { %s1621_s20 = scalar_select %p32_p4, %s1551_s13, %s34_s19  }
   0xc   : > { %146 = sbr.rel (!%p43_p3) target bundleno = 48 (0x30), region = 24  ;;  %s148_s21 = sand.u32 (%p43_p3), 1, %s1551_s13  }
   0xd   : > { %s1418_s22 = sshll.u32 (%p43_p3), %s1559_s15, 4  ;;  %s1149_s23 = sshll.u32 (%p43_p3), %s148_s21, 8 }
   0xe   : > { %s1629_s26 = scalar_lea.vmem (%p43_p3), %s1872_s0, %s1418_s22  ;;  %s1634_s27 = scalar_lea.vmem (%p43_p3), [#allocation3], %s1149_s23 }
   0xf   : > { %v169_v0 = vld [vmem:[%s1629_s26] sm:$0xff] (%p43_p3)  ;;  %v171_v1 = vld [vmem:[%s1629_s26 + $0x8] sm:$0xff] (%p43_p3) }
  0x10   : > { %v173_v2 = vld [vmem:[%s1629_s26 + $0x40] sm:$0xff] (%p43_p3)  ;;  %170 = vst [vmem:[%s1634_s27] sm:$0xff] (%p43_p3), %v169_v0  ;;  %v175_v3 = vld [vmem:[%s1629_s26 + $0x48] sm:$0xff] (%p43_p3) }
  0x11   : > { %172 = vst [vmem:[%s1634_s27 + $0x8] sm:$0xff] %v171_v1  ;;  %v177_v4 = vld [vmem:[%s1629_s26 + $0x80] sm:$0xff]  ;;  %v179_v5 = vld [vmem:[%s1629_s26 + $0x88] sm:$0xff] }
  0x12   : > { %174 = vst [vmem:[%s1634_s27 + $0x10] sm:$0xff] %v173_v2  ;;  %v181_v6 = vld [vmem:[%s1629_s26 + $0xc0] sm:$0xff]  ;;  %v183_v7 = vld [vmem:[%s1629_s26 + $0xc8] sm:$0xff] }
  0x13   : > { %176 = vst [vmem:[%s1634_s27 + $0x18] sm:$0xff] %v175_v3  ;;  %v185_v8 = vld [vmem:[%s1629_s26 + $0x100] sm:$0xff]  ;;  %v187_v9 = vld [vmem:[%s1629_s26 + $0x108] sm:$0xff] }
  0x14   : > { %178 = vst [vmem:[%s1634_s27 + $0x20] sm:$0xff] %v177_v4  ;;  %v189_v10 = vld [vmem:[%s1629_s26 + $0x140] sm:$0xff]  ;;  %v191_v11 = vld [vmem:[%s1629_s26 + $0x148] sm:$0xff] }
  0x15   : > { %180 = vst [vmem:[%s1634_s27 + $0x28] sm:$0xff] %v179_v5  ;;  %v193_v12 = vld [vmem:[%s1629_s26 + $0x180] sm:$0xff]  ;;  %v195_v13 = vld [vmem:[%s1629_s26 + $0x188] sm:$0xff] }
  0x16   : > { %182 = vst [vmem:[%s1634_s27 + $0x30] sm:$0xff] %v181_v6  ;;  %v197_v14 = vld [vmem:[%s1629_s26 + $0x1c0] sm:$0xff]  ;;  %v199_v15 = vld [vmem:[%s1629_s26 + $0x1c8] sm:$0xff] }
  0x17   : > { %184 = vst [vmem:[%s1634_s27 + $0x38] sm:$0xff] %v183_v7  ;;  %v201_v16 = vld [vmem:[%s1629_s26 + $0x200] sm:$0xff]  ;;  %v203_v17 = vld [vmem:[%s1629_s26 + $0x208] sm:$0xff] }
  0x18   : > { %186 = vst [vmem:[%s1634_s27 + $0x40] sm:$0xff] %v185_v8  ;;  %v205_v18 = vld [vmem:[%s1629_s26 + $0x240] sm:$0xff]  ;;  %v207_v19 = vld [vmem:[%s1629_s26 + $0x248] sm:$0xff] }
  0x19   : > { %188 = vst [vmem:[%s1634_s27 + $0x48] sm:$0xff] %v187_v9  ;;  %v209_v20 = vld [vmem:[%s1629_s26 + $0x280] sm:$0xff]  ;;  %v211_v21 = vld [vmem:[%s1629_s26 + $0x288] sm:$0xff] }
  0x1a   : > { %190 = vst [vmem:[%s1634_s27 + $0x50] sm:$0xff] %v189_v10  ;;  %v213_v22 = vld [vmem:[%s1629_s26 + $0x2c0] sm:$0xff]  ;;  %v215_v23 = vld [vmem:[%s1629_s26 + $0x2c8] sm:$0xff] }
  0x1b   : > { %192 = vst [vmem:[%s1634_s27 + $0x58] sm:$0xff] %v191_v11  ;;  %v217_v24 = vld [vmem:[%s1629_s26 + $0x300] sm:$0xff]  ;;  %v219_v25 = vld [vmem:[%s1629_s26 + $0x308] sm:$0xff] }
  0x1c   : > { %194 = vst [vmem:[%s1634_s27 + $0x60] sm:$0xff] %v193_v12  ;;  %v221_v26 = vld [vmem:[%s1629_s26 + $0x340] sm:$0xff]  ;;  %v223_v27 = vld [vmem:[%s1629_s26 + $0x348] sm:$0xff] }
  0x1d   : > { %196 = vst [vmem:[%s1634_s27 + $0x68] sm:$0xff] %v195_v13  ;;  %v225_v28 = vld [vmem:[%s1629_s26 + $0x380] sm:$0xff]  ;;  %v227_v29 = vld [vmem:[%s1629_s26 + $0x388] sm:$0xff] }
  0x1e   : > { %198 = vst [vmem:[%s1634_s27 + $0x70] sm:$0xff] %v197_v14  ;;  %v229_v30 = vld [vmem:[%s1629_s26 + $0x3c0] sm:$0xff]  ;;  %v231_v31 = vld [vmem:[%s1629_s26 + $0x3c8] sm:$0xff] }
  0x1f   : > { %200 = vst [vmem:[%s1634_s27 + $0x78] sm:$0xff] %v199_v15 }
  0x20   : > { %202 = vst [vmem:[%s1634_s27 + $0x80] sm:$0xff] %v201_v16 }
  0x21   : > { %204 = vst [vmem:[%s1634_s27 + $0x88] sm:$0xff] %v203_v17 }
  0x22   : > { %206 = vst [vmem:[%s1634_s27 + $0x90] sm:$0xff] %v205_v18 }
  0x23   : > { %208 = vst [vmem:[%s1634_s27 + $0x98] sm:$0xff] %v207_v19 }
  0x24   : > { %210 = vst [vmem:[%s1634_s27 + $0xa0] sm:$0xff] %v209_v20 }
  0x25   : > { %212 = vst [vmem:[%s1634_s27 + $0xa8] sm:$0xff] %v211_v21 }
  0x26   : > { %214 = vst [vmem:[%s1634_s27 + $0xb0] sm:$0xff] %v213_v22 }
  0x27   : > { %216 = vst [vmem:[%s1634_s27 + $0xb8] sm:$0xff] %v215_v23 }
  0x28   : > { %218 = vst [vmem:[%s1634_s27 + $0xc0] sm:$0xff] %v217_v24 }
  0x29   : > { %220 = vst [vmem:[%s1634_s27 + $0xc8] sm:$0xff] %v219_v25 }
  0x2a   : > { %222 = vst [vmem:[%s1634_s27 + $0xd0] sm:$0xff] %v221_v26 }
  0x2b   : > { %224 = vst [vmem:[%s1634_s27 + $0xd8] sm:$0xff] %v223_v27 }
  0x2c   : > { %226 = vst [vmem:[%s1634_s27 + $0xe0] sm:$0xff] %v225_v28 }
  0x2d   : > { %228 = vst [vmem:[%s1634_s27 + $0xe8] sm:$0xff] %v227_v29 }
  0x2e   : > { %230 = vst [vmem:[%s1634_s27 + $0xf0] sm:$0xff] %v229_v30 }
  0x2f   : > { %232 = vst [vmem:[%s1634_s27 + $0xf8] sm:$0xff] %v231_v31 }
  0x30 PF: > { %p1152_p6 = scmp.ge.s32.totalorder %s1563_s16, 1  ;;  %p246_p7 = scmp.lt.s32.totalorder %s1563_s16, 5 }
  0x32   : > { %p247_p8 = pnand %p1152_p6, %p246_p7 }
  0x33   : > { %s253_s28 = sand.u32 (!%p247_p8), 1, %s1547_s12   ;;  %s1154_s29 = sshll.u32 (!%p247_p8), %s1555_s14, 6 }
  0x34   : > { %250 = sbr.rel (%p247_p8) target bundleno = 391 (0x187), region = 51  ;;  %s1153_s30 = sshll.u32 (!%p247_p8), %s253_s28, 8 }
  0x35   : > { %p284_p9 = scmp.lt.s32.totalorder (!%p247_p8), %s1154_s29, 255  ;;  %s1706_s8 = scalar_lea.vmem (!%p247_p8), [#allocation3], %s1153_s30 }
  0x36   : > { %p1156_p10 = scmp.ne.s32.totalorder (!%p247_p8), %s1555_s14, 0 }
  0x39   : > { %s1883_s29 = smov (!%p284_p9, %s1154_s29), 255  ;;  %298 = sbr.rel (%p1156_p10) target bundleno = 79 (0x4f), region = 59 }
  0x3a   : > { %s1155_s4 = sshll.u32 %s1883_s29, 2 }
  0x3b   : > { %s1704_s7 = scalar_lea.vmem %s1873_s1, %s1155_s4 }
  0x3e   : > { %v1565_v32 = vmov 0.0  }
  0x3f   : > { %299 = vst [vmem:[#allocation2 + $0x30] sm:$0xff] %v1565_v32 }
  0x40   : > { %300 = vst [vmem:[#allocation2] sm:$0xff] %v1565_v32 }
  0x41   : > { %301 = vst [vmem:[#allocation2 + $0x58] sm:$0xff] %v1565_v32 }
  0x42   : > { %302 = vst [vmem:[#allocation2 + $0x18] sm:$0xff] %v1565_v32 }
  0x43   : > { %303 = vst [vmem:[#allocation2 + $0x50] sm:$0xff] %v1565_v32 }
  0x44   : > { %304 = vst [vmem:[#allocation2 + $0x68] sm:$0xff] %v1565_v32 }
  0x45   : > { %305 = vst [vmem:[#allocation2 + $0x8] sm:$0xff] %v1565_v32 }
  0x46   : > { %306 = vst [vmem:[#allocation2 + $0x48] sm:$0xff] %v1565_v32 }
  0x47   : > { %307 = vst [vmem:[#allocation2 + $0x40] sm:$0xff] %v1565_v32 }
  0x48   : > { %308 = vst [vmem:[#allocation2 + $0x20] sm:$0xff] %v1565_v32 }
  0x49   : > { %309 = vst [vmem:[#allocation2 + $0x10] sm:$0xff] %v1565_v32 }
  0x4a   : > { %310 = vst [vmem:[#allocation2 + $0x38] sm:$0xff] %v1565_v32 }
  0x4b   : > { %311 = vst [vmem:[#allocation2 + $0x60] sm:$0xff] %v1565_v32 }
  0x4c   : > { %312 = vst [vmem:[#allocation2 + $0x70] sm:$0xff] %v1565_v32 }
  0x4d   : > { %313 = vst [vmem:[#allocation2 + $0x78] sm:$0xff] %v1565_v32 }
  0x4e   : > { %314 = vst [vmem:[#allocation2 + $0x28] sm:$0xff] %v1565_v32 }
  0x4f PF: > { %v1458_v33 = vld [vmem:[%s1704_s7 + $0x38] sm:$0xff]  ;;  %v1457_v37 = vld [vmem:[%s1704_s7 + $0x30] sm:$0xff]  ;;  %v1456_v41 = vld [vmem:[%s1704_s7 + $0x28] sm:$0xff]  ;;  %p1413_p11 = scmp.ne.s32.totalorder %s1555_s14, 3 }
  0x50   : > { %v1466_v34 = vld [vmem:[%s1704_s7 + $0x78] sm:$0xff]  ;;  %779 = vmatpush.bf16.msra.mxu0 %v1458_v33  ;;  %v1465_v38 = vld [vmem:[%s1704_s7 + $0x70] sm:$0xff]  ;;  %v1464_v42 = vld [vmem:[%s1704_s7 + $0x68] sm:$0xff] }
  0x51   : > { %v1474_v35 = vld [vmem:[%s1704_s7 + $0xb8] sm:$0xff]  ;;  %828 = vmatpush.bf16.msra.mxu1 %v1466_v34  ;;  %v1473_v39 = vld [vmem:[%s1704_s7 + $0xb0] sm:$0xff]  ;;  %v1472_v43 = vld [vmem:[%s1704_s7 + $0xa8] sm:$0xff] }
  0x52   : > { %v1482_v36 = vld [vmem:[%s1704_s7 + $0xf8] sm:$0xff]  ;;  %877 = vmatpush.bf16.msra.mxu2 %v1474_v35  ;;  %v1481_v40 = vld [vmem:[%s1704_s7 + $0xf0] sm:$0xff]  ;;  %v1480_v44 = vld [vmem:[%s1704_s7 + $0xe8] sm:$0xff] }
  0x53   : > { %926 = vmatpush.bf16.msra.mxu3 %v1482_v36  ;;  %v1455_v45 = vld [vmem:[%s1704_s7 + $0x20] sm:$0xff]  ;;  %v1454_v49 = vld [vmem:[%s1704_s7 + $0x18] sm:$0xff]  ;;  %v1453_v53 = vld [vmem:[%s1704_s7 + $0x10] sm:$0xff] }
  0x54   : > { %780 = vmatpush.bf16.msra.mxu0 %v1457_v37  ;;  %v1463_v46 = vld [vmem:[%s1704_s7 + $0x60] sm:$0xff]  ;;  %v1462_v50 = vld [vmem:[%s1704_s7 + $0x58] sm:$0xff]  ;;  %v1461_v54 = vld [vmem:[%s1704_s7 + $0x50] sm:$0xff] }
  0x55   : > { %829 = vmatpush.bf16.msra.mxu1 %v1465_v38  ;;  %v1471_v47 = vld [vmem:[%s1704_s7 + $0xa0] sm:$0xff]  ;;  %v1470_v51 = vld [vmem:[%s1704_s7 + $0x98] sm:$0xff]  ;;  %v1469_v55 = vld [vmem:[%s1704_s7 + $0x90] sm:$0xff] }
  0x56   : > { %878 = vmatpush.bf16.msra.mxu2 %v1473_v39  ;;  %v1479_v48 = vld [vmem:[%s1704_s7 + $0xe0] sm:$0xff]  ;;  %v1478_v52 = vld [vmem:[%s1704_s7 + $0xd8] sm:$0xff]  ;;  %v1477_v56 = vld [vmem:[%s1704_s7 + $0xd0] sm:$0xff] }
  0x57   : > { %927 = vmatpush.bf16.msra.mxu3 %v1481_v40  ;;  %v1452_v57 = vld [vmem:[%s1704_s7 + $0x8] sm:$0xff]  ;;  %v1451_v61 = vld [vmem:[%s1704_s7] sm:$0xff]  ;;  %v1421_v2 = vld [vmem:[%s1706_s8 + $0xc] sm:$0xf0] }
  0x58   : > { %781 = vmatpush.bf16.msra.mxu0 %v1456_v41  ;;  %v1460_v58 = vld [vmem:[%s1704_s7 + $0x48] sm:$0xff]  ;;  %v1459_v62 = vld [vmem:[%s1704_s7 + $0x40] sm:$0xff]  ;;  %v1161_v4 = vld [vmem:[%s1706_s8 + $0x10] sm:$0xf0] }
  0x59   : > { %830 = vmatpush.bf16.msra.mxu1 %v1464_v42  ;;  %v1468_v59 = vld [vmem:[%s1704_s7 + $0x88] sm:$0xff]  ;;  %v1467_v63 = vld [vmem:[%s1704_s7 + $0x80] sm:$0xff]  ;;  %v1422_v6 = vld [vmem:[%s1706_s8 + $0x14] sm:$0xf0] }
  0x5a   : > { %879 = vmatpush.bf16.msra.mxu2 %v1472_v43  ;;  %v1476_v60 = vld [vmem:[%s1704_s7 + $0xc8] sm:$0xff]  ;;  %v1475_v0 = vld [vmem:[%s1704_s7 + $0xc0] sm:$0xff]  ;;  %v1169_v8 = vld [vmem:[%s1706_s8 + $0x18] sm:$0xf0] }
  0x5b   : > { %928 = vmatpush.bf16.msra.mxu3 %v1480_v44  ;;  %v1159_v1 = vld [vmem:[%s1706_s8] sm:$0xf]  ;;  %v1419_v3 = vld [vmem:[%s1706_s8 + $0x4] sm:$0xf]  ;;  %v1167_v5 = vld [vmem:[%s1706_s8 + $0x8] sm:$0xf] }
  0x5c   : > { %782 = vmatpush.bf16.msra.mxu0 %v1455_v45  ;;  %v1420_v7 = vld [vmem:[%s1706_s8 + $0xc] sm:$0xf]  ;;  %v1160_v9 = vor.u32 %v1421_v2, %v1159_v1  ;;  %v1164_v10 = vor.u32 %v1419_v3, %v1161_v4  ;;  %v1168_v11 = vor.u32 %v1422_v6, %v1167_v5  ;;  %v1175_v13 = vld [vmem:[%s1706_s8 + $0x20] sm:$0xf]  ;;  %v1425_v14 = vld [vmem:[%s1706_s8 + $0x2c] sm:$0xf0] }
  0x5d   : > { %831 = vmatpush.bf16.msra.mxu1 %v1463_v46  ;;  %v1172_v12 = vor.u32 %v1420_v7, %v1169_v8  ;;  %v1423_v15 = vld [vmem:[%s1706_s8 + $0x24] sm:$0xf]  ;;  %v1177_v16 = vld [vmem:[%s1706_s8 + $0x30] sm:$0xf0]  ;;  %v1183_v17 = vld [vmem:[%s1706_s8 + $0x28] sm:$0xf]  ;;  %v1176_v21 = vor.u32 %v1425_v14, %v1175_v13 }
  0x5e   : > { %880 = vmatpush.bf16.msra.mxu2 %v1471_v47  ;;  %v1426_v18 = vld [vmem:[%s1706_s8 + $0x34] sm:$0xf0]  ;;  %v1424_v19 = vld [vmem:[%s1706_s8 + $0x2c] sm:$0xf]  ;;  %v1185_v20 = vld [vmem:[%s1706_s8 + $0x38] sm:$0xf0]  ;;  %v1180_v22 = vor.u32 %v1423_v15, %v1177_v16 }
  0x5f   : > { %929 = vmatpush.bf16.msra.mxu3 %v1479_v48  ;;  %v1184_v23 = vor.u32 %v1426_v18, %v1183_v17  ;;  %v1188_v24 = vor.u32 %v1424_v19, %v1185_v20  ;;  %v1191_v25 = vld [vmem:[%s1706_s8 + $0x40] sm:$0xf]  ;;  %v1429_v26 = vld [vmem:[%s1706_s8 + $0x4c] sm:$0xf0]  ;;  %v1427_v27 = vld [vmem:[%s1706_s8 + $0x44] sm:$0xf] }
  0x60   : > { %783 = vmatpush.bf16.msra.mxu0 %v1454_v49  ;;  %v1193_v28 = vld [vmem:[%s1706_s8 + $0x50] sm:$0xf0]  ;;  %v1199_v29 = vld [vmem:[%s1706_s8 + $0x48] sm:$0xf]  ;;  %v1430_v30 = vld [vmem:[%s1706_s8 + $0x54] sm:$0xf0]  ;;  %v1192_v33 = vor.u32 %v1429_v26, %v1191_v25 }
  0x61   : > { %832 = vmatpush.bf16.msra.mxu1 %v1462_v50  ;;  %v1428_v31 = vld [vmem:[%s1706_s8 + $0x4c] sm:$0xf]  ;;  %v1201_v32 = vld [vmem:[%s1706_s8 + $0x58] sm:$0xf0]  ;;  %v1196_v34 = vor.u32 %v1427_v27, %v1193_v28  ;;  %v1200_v35 = vor.u32 %v1430_v30, %v1199_v29  ;;  %v1207_v37 = vld [vmem:[%s1706_s8 + $0x60] sm:$0xf] }
  0x62   : > { %881 = vmatpush.bf16.msra.mxu2 %v1470_v51  ;;  %v1204_v36 = vor.u32 %v1428_v31, %v1201_v32  ;;  %v1433_v38 = vld [vmem:[%s1706_s8 + $0x6c] sm:$0xf0]  ;;  %v1431_v39 = vld [vmem:[%s1706_s8 + $0x64] sm:$0xf]  ;;  %v1209_v40 = vld [vmem:[%s1706_s8 + $0x70] sm:$0xf0] }
  0x63   : > { %930 = vmatpush.bf16.msra.mxu3 %v1478_v52  ;;  %v1215_v41 = vld [vmem:[%s1706_s8 + $0x68] sm:$0xf]  ;;  %v1434_v42 = vld [vmem:[%s1706_s8 + $0x74] sm:$0xf0]  ;;  %v1432_v43 = vld [vmem:[%s1706_s8 + $0x6c] sm:$0xf]  ;;  %v1208_v45 = vor.u32 %v1433_v38, %v1207_v37  ;;  %v1212_v46 = vor.u32 %v1431_v39, %v1209_v40 }
  0x64   : > { %784 = vmatpush.bf16.msra.mxu0 %v1453_v53  ;;  %v1217_v44 = vld [vmem:[%s1706_s8 + $0x78] sm:$0xf0]  ;;  %v1216_v47 = vor.u32 %v1434_v42, %v1215_v41  ;;  %v1223_v49 = vld [vmem:[%s1706_s8 + $0x80] sm:$0xf]  ;;  %v1437_v50 = vld [vmem:[%s1706_s8 + $0x8c] sm:$0xf0] }
  0x65   : > { %833 = vmatpush.bf16.msra.mxu1 %v1461_v54  ;;  %v1220_v48 = vor.u32 %v1432_v43, %v1217_v44  ;;  %v1435_v51 = vld [vmem:[%s1706_s8 + $0x84] sm:$0xf]  ;;  %v1225_v52 = vld [vmem:[%s1706_s8 + $0x90] sm:$0xf0]  ;;  %v1231_v53 = vld [vmem:[%s1706_s8 + $0x88] sm:$0xf] }
  0x66   : > { %882 = vmatpush.bf16.msra.mxu2 %v1469_v55  ;;  %v1438_v54 = vld [vmem:[%s1706_s8 + $0x94] sm:$0xf0]  ;;  %v1436_v55 = vld [vmem:[%s1706_s8 + $0x8c] sm:$0xf]  ;;  %v1247_v1 = vld [vmem:[%s1706_s8 + $0xa8] sm:$0xf] }
  0x67   : > { %931 = vmatpush.bf16.msra.mxu3 %v1477_v56  ;;  %v1233_v56 = vld [vmem:[%s1706_s8 + $0x98] sm:$0xf0]  ;;  %v1442_v2 = vld [vmem:[%s1706_s8 + $0xb4] sm:$0xf0]  ;;  %v1440_v3 = vld [vmem:[%s1706_s8 + $0xac] sm:$0xf] }
  0x68   : > { %785 = vmatpush.bf16.msra.mxu0 %v1452_v57  ;;  %v1224_v57 = vor.u32 %v1437_v50, %v1223_v49  ;;  %v1249_v4 = vld [vmem:[%s1706_s8 + $0xb8] sm:$0xf0]  ;;  %v1248_v7 = vor.u32 %v1442_v2, %v1247_v1  ;;  %v1263_v13 = vld [vmem:[%s1706_s8 + $0xc8] sm:$0xf]  ;;  %v1446_v14 = vld [vmem:[%s1706_s8 + $0xd4] sm:$0xf0] }
  0x69   : > { %834 = vmatpush.bf16.msra.mxu1 %v1460_v58  ;;  %v1228_v58 = vor.u32 %v1435_v51, %v1225_v52  ;;  %v1252_v8 = vor.u32 %v1440_v3, %v1249_v4  ;;  %v1444_v15 = vld [vmem:[%s1706_s8 + $0xcc] sm:$0xf]  ;;  %v1265_v16 = vld [vmem:[%s1706_s8 + $0xd8] sm:$0xf0]  ;;  %v1264_v19 = vor.u32 %v1446_v14, %v1263_v13  ;;  %v1279_v25 = vld [vmem:[%s1706_s8 + $0xe8] sm:$0xf] }
  0x6a   : > { %883 = vmatpush.bf16.msra.mxu2 %v1468_v59  ;;  %v1232_v59 = vor.u32 %v1438_v54, %v1231_v53  ;;  %v1268_v20 = vor.u32 %v1444_v15, %v1265_v16  ;;  %v1450_v26 = vld [vmem:[%s1706_s8 + $0xf4] sm:$0xf0]  ;;  %v1448_v27 = vld [vmem:[%s1706_s8 + $0xec] sm:$0xf]  ;;  %v1281_v28 = vld [vmem:[%s1706_s8 + $0xf8] sm:$0xf0] }
  0x6b   : > { %932 = vmatpush.bf16.msra.mxu3 %v1476_v60  ;;  %v1236_v60 = vor.u32 %v1436_v55, %v1233_v56  ;;  %v1280_v31 = vor.u32 %v1450_v26, %v1279_v25  ;;  %v1284_v32 = vor.u32 %v1448_v27, %v1281_v28  ;;  %v315_v41 = vld [vmem:[#allocation2 + $0x30] sm:$0xff]  ;;  %v316_v50 = vld [vmem:[#allocation2] sm:$0xff]  ;;  %v318_v4 = vld [vmem:[#allocation2 + $0x18] sm:$0xff] }
  0x6c   : > { %786 = vmatpush.bf16.msra.mxu0 %v1451_v61  ;;  %v1239_v61 = vld [vmem:[%s1706_s8 + $0xa0] sm:$0xf]  ;;  %v319_v13 = vld [vmem:[#allocation2 + $0x50] sm:$0xff] }
  0x6d   : > { %835 = vmatpush.bf16.msra.mxu1 %v1459_v62  ;;  %v1441_v62 = vld [vmem:[%s1706_s8 + $0xac] sm:$0xf0] }
  0x6e   : > { %884 = vmatpush.bf16.msra.mxu2 %v1467_v63  ;;  %v1439_v63 = vld [vmem:[%s1706_s8 + $0xa4] sm:$0xf]  ;;  %v1240_v5 = vor.u32 %v1441_v62, %v1239_v61 }
  0x6f   : > { %933 = vmatpush.bf16.msra.mxu3 %v1475_v0  ;;  %787 = vmatmul.bf16.vlgmr.msra.gmra.mxu0 %v1160_v9  ;;  %v1241_v0 = vld [vmem:[%s1706_s8 + $0xb0] sm:$0xf0]  ;;  %v1255_v9 = vld [vmem:[%s1706_s8 + $0xc0] sm:$0xf] }
  0x70   : > { %836 = vmatmul.bf16.vlgmr.msra.gmra.mxu1 %v1164_v10  ;;  %v1244_v6 = vor.u32 %v1439_v63, %v1241_v0  ;;  %v1445_v10 = vld [vmem:[%s1706_s8 + $0xcc] sm:$0xf0] }
  0x71   : > { %885 = vmatmul.bf16.vlgmr.msra.gmra.mxu2 %v1168_v11  ;;  %v1443_v11 = vld [vmem:[%s1706_s8 + $0xc4] sm:$0xf]  ;;  %v1256_v17 = vor.u32 %v1445_v10, %v1255_v9 }
  0x72   : > { %934 = vmatmul.bf16.vlgmr.msra.gmra.mxu3 %v1172_v12  ;;  %v1257_v12 = vld [vmem:[%s1706_s8 + $0xd0] sm:$0xf0] }
  0x73   : > { %v1260_v18 = vor.u32 %v1443_v11, %v1257_v12 }
  0x7f   : > { %792 = vmatmul.bf16.gmra.mxu0 %v1176_v21  ;;  %v1271_v21 = vld [vmem:[%s1706_s8 + $0xe0] sm:$0xf] }
  0x80   : > { %841 = vmatmul.bf16.gmra.mxu1 %v1180_v22  ;;  %v1449_v22 = vld [vmem:[%s1706_s8 + $0xec] sm:$0xf0] }
  0x81   : > { %890 = vmatmul.bf16.gmra.mxu2 %v1184_v23  ;;  %v1447_v23 = vld [vmem:[%s1706_s8 + $0xe4] sm:$0xf]  ;;  %v1272_v29 = vor.u32 %v1449_v22, %v1271_v21  ;;  %v320_v22 = vld [vmem:[#allocation2 + $0x68] sm:$0xff] }
  0x82   : > { %939 = vmatmul.bf16.gmra.mxu3 %v1188_v24  ;;  %v1273_v24 = vld [vmem:[%s1706_s8 + $0xf0] sm:$0xf0] }
  0x83   : > { %v1276_v30 = vor.u32 %v1447_v23, %v1273_v24 }
  0x8f   : > { %797 = vmatmul.bf16.gmra.mxu0 %v1192_v33 }
  0x90   : > { %846 = vmatmul.bf16.gmra.mxu1 %v1196_v34 }
  0x91   : > { %895 = vmatmul.bf16.gmra.mxu2 %v1200_v35 }
  0x92   : > { %944 = vmatmul.bf16.gmra.mxu3 %v1204_v36 }
  0x9f   : > { %802 = vmatmul.bf16.gmra.mxu0 %v1208_v45 }
  0xa0   : > { %851 = vmatmul.bf16.gmra.mxu1 %v1212_v46 }
  0xa1   : > { %900 = vmatmul.bf16.gmra.mxu2 %v1216_v47 }
  0xa2   : > { %949 = vmatmul.bf16.gmra.mxu3 %v1220_v48 }
  0xaf   : > { %807 = vmatmul.bf16.gmra.mxu0 %v1224_v57 }
  0xb0   : > { %856 = vmatmul.bf16.gmra.mxu1 %v1228_v58 }
  0xb1   : > { %905 = vmatmul.bf16.gmra.mxu2 %v1232_v59  ;;  %v317_v59 = vld [vmem:[#allocation2 + $0x58] sm:$0xff] }
  0xb2   : > { %954 = vmatmul.bf16.gmra.mxu3 %v1236_v60 }
  0xbf   : > { %812 = vmatmul.bf16.gmra.mxu0 %v1240_v5 }
  0xc0   : > { %861 = vmatmul.bf16.gmra.mxu1 %v1244_v6 }
  0xc1   : > { %910 = vmatmul.bf16.gmra.mxu2 %v1248_v7 }
  0xc2   : > { %959 = vmatmul.bf16.gmra.mxu3 %v1252_v8 }
  0xcf   : > { %817 = vmatmul.bf16.gmra.mxu0 %v1256_v17 }
  0xd0   : > { %866 = vmatmul.bf16.gmra.mxu1 %v1260_v18 }
  0xd1   : > { %915 = vmatmul.bf16.gmra.mxu2 %v1264_v19 }
  0xd2   : > { %964 = vmatmul.bf16.gmra.mxu3 %v1268_v20 }
  0xdf   : > { %822 = vmatmul.bf16.gmra.mxu0 %v1272_v29 }
  0xe0   : > { %871 = vmatmul.bf16.gmra.mxu1 %v1276_v30 }
  0xe1   : > { %920 = vmatmul.bf16.gmra.mxu2 %v1280_v31  ;;  %v321_v31 = vld [vmem:[#allocation2 + $0x8] sm:$0xff] }
  0xe2   : > { %969 = vmatmul.bf16.gmra.mxu3 %v1284_v32 }
  0xec   : > { %v788_v33 = vpop.f32.mrf.mxu0 }
  0xed   : > { %v837_v34 = vpop.f32.mrf.mxu1 }
  0xee   : > { %v838_v35 = vadd.f32 %v837_v34, %v788_v33 }
  0xf4   : > { %v886_v36 = vpop.f32.mrf.mxu2  ;;  %v790_v39 = vpop.f32.mrf.mxu0 }
  0xf5   : > { %v935_v37 = vpop.f32.mrf.mxu3  ;;  %v887_v38 = vadd.f32 %v886_v36, %v838_v35  ;;  %v839_v40 = vpop.f32.mrf.mxu1 }
  0xf6   : > { %v840_v44 = vadd.f32 %v839_v40, %v790_v39  ;;  %v322_v40 = vld [vmem:[#allocation2 + $0x48] sm:$0xff] }
  0xf7   : > { %v936_v42 = vadd.f32 %v935_v37, %v887_v38 }
  0xf9   : > { %v975_v43 = vadd.f32 %v936_v42, %v315_v41 }
  0xfb   : > { %991 = vst [vmem:[#allocation2 + $0x30] sm:$0xff] %v975_v43 }
  0xfc   : > { %v888_v45 = vpop.f32.mrf.mxu2  ;;  %v793_v48 = vpop.f32.mrf.mxu0 }
  0xfd   : > { %v937_v46 = vpop.f32.mrf.mxu3  ;;  %v889_v47 = vadd.f32 %v888_v45, %v840_v44  ;;  %v842_v49 = vpop.f32.mrf.mxu1 }
  0xfe   : > { %v843_v53 = vadd.f32 %v842_v49, %v793_v48  ;;  %v323_v49 = vld [vmem:[#allocation2 + $0x40] sm:$0xff] }
  0xff   : > { %v938_v51 = vadd.f32 %v937_v46, %v889_v47 }
 0x101   : > { %v976_v52 = vadd.f32 %v938_v51, %v316_v50 }
 0x103   : > { %992 = vst [vmem:[#allocation2] sm:$0xff] %v976_v52 }
 0x104   : > { %v891_v54 = vpop.f32.mrf.mxu2  ;;  %v795_v57 = vpop.f32.mrf.mxu0 }
 0x105   : > { %v940_v55 = vpop.f32.mrf.mxu3  ;;  %v892_v56 = vadd.f32 %v891_v54, %v843_v53  ;;  %v844_v58 = vpop.f32.mrf.mxu1 }
 0x106   : > { %v845_v62 = vadd.f32 %v844_v58, %v795_v57  ;;  %v324_v58 = vld [vmem:[#allocation2 + $0x20] sm:$0xff] }
 0x107   : > { %v941_v60 = vadd.f32 %v940_v55, %v892_v56 }
 0x109   : > { %v977_v61 = vadd.f32 %v941_v60, %v317_v59 }
 0x10b   : > { %993 = vst [vmem:[#allocation2 + $0x58] sm:$0xff] %v977_v61 }
 0x10c   : > { %v893_v63 = vpop.f32.mrf.mxu2  ;;  %v798_v2 = vpop.f32.mrf.mxu0 }
 0x10d   : > { %v942_v0 = vpop.f32.mrf.mxu3  ;;  %v894_v1 = vadd.f32 %v893_v63, %v845_v62  ;;  %v847_v3 = vpop.f32.mrf.mxu1 }
 0x10e   : > { %v848_v7 = vadd.f32 %v847_v3, %v798_v2  ;;  %v325_v3 = vld [vmem:[#allocation2 + $0x10] sm:$0xff] }
 0x10f   : > { %v943_v5 = vadd.f32 %v942_v0, %v894_v1 }
 0x111   : > { %v978_v6 = vadd.f32 %v943_v5, %v318_v4 }
 0x113   : > { %994 = vst [vmem:[#allocation2 + $0x18] sm:$0xff] %v978_v6 }
 0x114   : > { %v896_v8 = vpop.f32.mrf.mxu2  ;;  %v800_v11 = vpop.f32.mrf.mxu0 }
 0x115   : > { %v945_v9 = vpop.f32.mrf.mxu3  ;;  %v897_v10 = vadd.f32 %v896_v8, %v848_v7  ;;  %v849_v12 = vpop.f32.mrf.mxu1 }
 0x116   : > { %v850_v16 = vadd.f32 %v849_v12, %v800_v11  ;;  %v326_v12 = vld [vmem:[#allocation2 + $0x38] sm:$0xff] }
 0x117   : > { %v946_v14 = vadd.f32 %v945_v9, %v897_v10 }
 0x119   : > { %v979_v15 = vadd.f32 %v946_v14, %v319_v13 }
 0x11b   : > { %995 = vst [vmem:[#allocation2 + $0x50] sm:$0xff] %v979_v15 }
 0x11c   : > { %v898_v17 = vpop.f32.mrf.mxu2  ;;  %v803_v20 = vpop.f32.mrf.mxu0 }
 0x11d   : > { %v947_v18 = vpop.f32.mrf.mxu3  ;;  %v899_v19 = vadd.f32 %v898_v17, %v850_v16  ;;  %v852_v21 = vpop.f32.mrf.mxu1 }
 0x11e   : > { %v853_v25 = vadd.f32 %v852_v21, %v803_v20  ;;  %v327_v21 = vld [vmem:[#allocation2 + $0x60] sm:$0xff] }
 0x11f   : > { %v948_v23 = vadd.f32 %v947_v18, %v899_v19 }
 0x121   : > { %v980_v24 = vadd.f32 %v948_v23, %v320_v22 }
 0x123   : > { %996 = vst [vmem:[#allocation2 + $0x68] sm:$0xff] %v980_v24 }
 0x124   : > { %v901_v26 = vpop.f32.mrf.mxu2  ;;  %v805_v29 = vpop.f32.mrf.mxu0 }
 0x125   : > { %v950_v27 = vpop.f32.mrf.mxu3  ;;  %v902_v28 = vadd.f32 %v901_v26, %v853_v25  ;;  %v854_v30 = vpop.f32.mrf.mxu1 }
 0x126   : > { %v855_v34 = vadd.f32 %v854_v30, %v805_v29 }
 0x127   : > { %v951_v32 = vadd.f32 %v950_v27, %v902_v28  ;;  %v328_v28 = vld [vmem:[#allocation2 + $0x70] sm:$0xff] }
 0x129   : > { %v981_v33 = vadd.f32 %v951_v32, %v321_v31 }
 0x12b   : > { %997 = vst [vmem:[#allocation2 + $0x8] sm:$0xff] %v981_v33 }
 0x12c   : > { %v903_v35 = vpop.f32.mrf.mxu2  ;;  %v808_v38 = vpop.f32.mrf.mxu0 }
 0x12d   : > { %v952_v36 = vpop.f32.mrf.mxu3  ;;  %v904_v37 = vadd.f32 %v903_v35, %v855_v34  ;;  %v857_v39 = vpop.f32.mrf.mxu1 }
 0x12e   : > { %v858_v43 = vadd.f32 %v857_v39, %v808_v38 }
 0x12f   : > { %v953_v41 = vadd.f32 %v952_v36, %v904_v37  ;;  %v329_v37 = vld [vmem:[#allocation2 + $0x78] sm:$0xff] }
 0x131   : > { %v982_v42 = vadd.f32 %v953_v41, %v322_v40 }
 0x133   : > { %998 = vst [vmem:[#allocation2 + $0x48] sm:$0xff] %v982_v42 }
 0x134   : > { %v906_v44 = vpop.f32.mrf.mxu2  ;;  %v810_v47 = vpop.f32.mrf.mxu0 }
 0x135   : > { %v955_v45 = vpop.f32.mrf.mxu3  ;;  %v907_v46 = vadd.f32 %v906_v44, %v858_v43  ;;  %v859_v48 = vpop.f32.mrf.mxu1 }
 0x136   : > { %v860_v52 = vadd.f32 %v859_v48, %v810_v47 }
 0x137   : > { %v956_v50 = vadd.f32 %v955_v45, %v907_v46  ;;  %v330_v45 = vld [vmem:[#allocation2 + $0x28] sm:$0xff] }
 0x139   : > { %v983_v51 = vadd.f32 %v956_v50, %v323_v49 }
 0x13b   : > { %999 = vst [vmem:[#allocation2 + $0x40] sm:$0xff] %v983_v51 }
 0x13c   : > { %v908_v53 = vpop.f32.mrf.mxu2  ;;  %v813_v56 = vpop.f32.mrf.mxu0 }
 0x13d   : > { %v957_v54 = vpop.f32.mrf.mxu3  ;;  %v909_v55 = vadd.f32 %v908_v53, %v860_v52  ;;  %v862_v57 = vpop.f32.mrf.mxu1 }
 0x13e   : > { %v863_v61 = vadd.f32 %v862_v57, %v813_v56 }
 0x13f   : > { %v958_v59 = vadd.f32 %v957_v54, %v909_v55 }
 0x141   : > { %v984_v60 = vadd.f32 %v958_v59, %v324_v58 }
 0x143   : > { %1000 = vst [vmem:[#allocation2 + $0x20] sm:$0xff] %v984_v60 }
 0x144   : > { %v911_v62 = vpop.f32.mrf.mxu2  ;;  %v815_v1 = vpop.f32.mrf.mxu0 }
 0x145   : > { %v960_v63 = vpop.f32.mrf.mxu3  ;;  %v912_v0 = vadd.f32 %v911_v62, %v863_v61  ;;  %v864_v2 = vpop.f32.mrf.mxu1 }
 0x146   : > { %v865_v6 = vadd.f32 %v864_v2, %v815_v1 }
 0x147   : > { %v961_v4 = vadd.f32 %v960_v63, %v912_v0 }
 0x149   : > { %v985_v5 = vadd.f32 %v961_v4, %v325_v3 }
 0x14b   : > { %1001 = vst [vmem:[#allocation2 + $0x10] sm:$0xff] %v985_v5 }
 0x14c   : > { %v913_v7 = vpop.f32.mrf.mxu2  ;;  %v818_v10 = vpop.f32.mrf.mxu0 }
 0x14d   : > { %v962_v8 = vpop.f32.mrf.mxu3  ;;  %v914_v9 = vadd.f32 %v913_v7, %v865_v6  ;;  %v867_v11 = vpop.f32.mrf.mxu1 }
 0x14e   : > { %v868_v15 = vadd.f32 %v867_v11, %v818_v10 }
 0x14f   : > { %v963_v13 = vadd.f32 %v962_v8, %v914_v9 }
 0x151   : > { %v986_v14 = vadd.f32 %v963_v13, %v326_v12 }
 0x153   : > { %1002 = vst [vmem:[#allocation2 + $0x38] sm:$0xff] %v986_v14 }
 0x154   : > { %v916_v16 = vpop.f32.mrf.mxu2  ;;  %v820_v19 = vpop.f32.mrf.mxu0 }
 0x155   : > { %v965_v17 = vpop.f32.mrf.mxu3  ;;  %v917_v18 = vadd.f32 %v916_v16, %v868_v15  ;;  %v869_v20 = vpop.f32.mrf.mxu1 }
 0x156   : > { %v870_v24 = vadd.f32 %v869_v20, %v820_v19 }
 0x157   : > { %v966_v22 = vadd.f32 %v965_v17, %v917_v18 }
 0x159   : > { %v987_v23 = vadd.f32 %v966_v22, %v327_v21 }
 0x15b   : > { %1003 = vst [vmem:[#allocation2 + $0x60] sm:$0xff] %v987_v23 }
 0x15c   : > { %v918_v25 = vpop.f32.mrf.mxu2  ;;  %v823_v29 = vpop.f32.mrf.mxu0 }
 0x15d   : > { %v967_v26 = vpop.f32.mrf.mxu3  ;;  %v919_v27 = vadd.f32 %v918_v25, %v870_v24  ;;  %v872_v30 = vpop.f32.mrf.mxu1 }
 0x15e   : > { %v873_v33 = vadd.f32 %v872_v30, %v823_v29 }
 0x15f   : > { %v968_v31 = vadd.f32 %v967_v26, %v919_v27 }
 0x161   : > { %v988_v32 = vadd.f32 %v968_v31, %v328_v28 }
 0x163   : > { %1004 = vst [vmem:[#allocation2 + $0x70] sm:$0xff] %v988_v32 }
 0x164   : > { %v921_v34 = vpop.f32.mrf.mxu2  ;;  %v825_v39 = vpop.f32.mrf.mxu0 }
 0x165   : > { %v970_v35 = vpop.f32.mrf.mxu3  ;;  %v922_v36 = vadd.f32 %v921_v34, %v873_v33  ;;  %v874_v40 = vpop.f32.mrf.mxu1 }
 0x166   : > { %v875_v42 = vadd.f32 %v874_v40, %v825_v39 }
 0x167   : > { %v971_v38 = vadd.f32 %v970_v35, %v922_v36 }
 0x169   : > { %v989_v41 = vadd.f32 %v971_v38, %v329_v37 }
 0x16b   : > { %1005 = vst [vmem:[#allocation2 + $0x78] sm:$0xff] %v989_v41 }
 0x16c   : > { %v923_v43 = vpop.f32.mrf.mxu2 }
 0x16d   : > { %v924_v44 = vadd.f32 %v923_v43, %v875_v42  ;;  %v972_v46 = vpop.f32.mrf.mxu3 }
 0x16f   : > { %v973_v47 = vadd.f32 %v972_v46, %v924_v44  ;;  %1010 = sbr.rel (%p1413_p11) target bundleno = 391 (0x187), region = 63 }
 0x171   : > { %v990_v48 = vadd.f32 %v973_v47, %v330_v45 }
 0x173   : > { %1006 = vst [vmem:[#allocation2 + $0x28] sm:$0xff] %v990_v48 }
 0x174   : > { %v1011_v49 = vld [vmem:[#allocation2 + $0x30] sm:$0xff]  ;;  %v1524_v50 = vld [vmem:[%s1874_s2] ss:$0 sm:$0xff]  ;;  %v1013_v52 = vld [vmem:[#allocation2 + $0x58] sm:$0xff] }
 0x175   : > { %v1012_v51 = vld [vmem:[#allocation2] sm:$0xff]  ;;  %v1014_v53 = vld [vmem:[#allocation2 + $0x18] sm:$0xff]  ;;  %v1031_v54 = vadd.f32 %v1524_v50, %v1011_v49  ;;  %v1033_v56 = vadd.f32 %v1524_v50, %v1013_v52  ;;  %v1015_v57 = vld [vmem:[#allocation2 + $0x50] sm:$0xff] }
 0x176   : > { %v1032_v55 = vadd.f32 %v1524_v50, %v1012_v51  ;;  %v1016_v58 = vld [vmem:[#allocation2 + $0x68] sm:$0xff]  ;;  %v1034_v59 = vadd.f32 %v1524_v50, %v1014_v53  ;;  %v1035_v61 = vadd.f32 %v1524_v50, %v1015_v57  ;;  %v1019_v0 = vld [vmem:[#allocation2 + $0x40] sm:$0xff]  ;;  %v1021_v4 = vld [vmem:[#allocation2 + $0x10] sm:$0xff] }
 0x177   : > { %v1017_v60 = vld [vmem:[#allocation2 + $0x8] sm:$0xff]  ;;  %1047 = vst [vmem:[%s1875_s3] sm:$0xff] %v1031_v54  ;;  %v1036_v63 = vadd.f32 %v1524_v50, %v1016_v58  ;;  %v1020_v2 = vld [vmem:[#allocation2 + $0x20] sm:$0xff]  ;;  %v1039_v5 = vadd.f32 %v1524_v50, %v1019_v0  ;;  %v1022_v6 = vld [vmem:[#allocation2 + $0x38] sm:$0xff]  ;;  %v1041_v9 = vadd.f32 %v1524_v50, %v1021_v4 }
 0x178   : > { %v1018_v62 = vld [vmem:[#allocation2 + $0x48] sm:$0xff]  ;;  %1048 = vst [vmem:[%s1875_s3 + $0x8] sm:$0xff] %v1032_v55  ;;  %v1037_v1 = vadd.f32 %v1524_v50, %v1017_v60  ;;  %v1040_v7 = vadd.f32 %v1524_v50, %v1020_v2  ;;  %v1023_v8 = vld [vmem:[#allocation2 + $0x60] sm:$0xff]  ;;  %v1024_v10 = vld [vmem:[#allocation2 + $0x70] sm:$0xff]  ;;  %v1042_v11 = vadd.f32 %v1524_v50, %v1022_v6 }
 0x179   : > { %1049 = vst [vmem:[%s1875_s3 + $0x10] sm:$0xff] %v1033_v56  ;;  %v1038_v3 = vadd.f32 %v1524_v50, %v1018_v62  ;;  %v1025_v12 = vld [vmem:[#allocation2 + $0x78] sm:$0xff]  ;;  %v1043_v13 = vadd.f32 %v1524_v50, %v1023_v8  ;;  %v1044_v15 = vadd.f32 %v1524_v50, %v1024_v10 }
 0x17a   : > { %1050 = vst [vmem:[%s1875_s3 + $0x18] sm:$0xff] %v1034_v59  ;;  %v1026_v14 = vld [vmem:[#allocation2 + $0x28] sm:$0xff]  ;;  %v1045_v16 = vadd.f32 %v1524_v50, %v1025_v12 }
 0x17b   : > { %1051 = vst [vmem:[%s1875_s3 + $0x20] sm:$0xff] %v1035_v61  ;;  %v1046_v17 = vadd.f32 %v1524_v50, %v1026_v14 }
 0x17c   : > { %1052 = vst [vmem:[%s1875_s3 + $0x28] sm:$0xff] %v1036_v63 }
 0x17d   : > { %1053 = vst [vmem:[%s1875_s3 + $0x30] sm:$0xff] %v1037_v1 }
 0x17e   : > { %1054 = vst [vmem:[%s1875_s3 + $0x38] sm:$0xff] %v1038_v3 }
 0x17f   : > { %1055 = vst [vmem:[%s1875_s3 + $0x40] sm:$0xff] %v1039_v5 }
 0x180   : > { %1056 = vst [vmem:[%s1875_s3 + $0x48] sm:$0xff] %v1040_v7 }
 0x181   : > { %1057 = vst [vmem:[%s1875_s3 + $0x50] sm:$0xff] %v1041_v9 }
 0x182   : > { %1058 = vst [vmem:[%s1875_s3 + $0x58] sm:$0xff] %v1042_v11 }
 0x183   : > { %1059 = vst [vmem:[%s1875_s3 + $0x60] sm:$0xff] %v1043_v13 }
 0x184   : > { %1060 = vst [vmem:[%s1875_s3 + $0x68] sm:$0xff] %v1044_v15 }
 0x185   : > { %1061 = vst [vmem:[%s1875_s3 + $0x70] sm:$0xff] %v1045_v16 }
 0x186   : > { %1062 = vst [vmem:[%s1875_s3 + $0x78] sm:$0xff] %v1046_v17 }
 0x187 PF: > { %s13_s16 = sadd.s32 1, %s1563_s16   ;;  %s1876_s12 = smov %s1551_s13 }
 0x188   : > { %p10_p12 = scmp.ge.s32.totalorder %s13_s16, 6   ;;  %s1877_s13 = smov %s1621_s20 }
 0x189   : > { %s1878_s14 = smov %s1559_s15  ;;  %s1879_s15 = smov %s1881_s17 }
 0x18a   :  { %12 = sbr.rel (!%p10_p12) target bundleno = 3 (0x3), region = 101 }

</bundles_post_ra>
